<compile_context>
chip_gen: v7x
topology: tpu7x:2x2x1
jax: 0.10.0
libtpu: 0.0.40
codegen_flags: <defaults>
</compile_context>

<pallas_src>
import jax
import jax.numpy as jnp
from jax.experimental import pallas as pl
from jax.experimental.pallas import tpu as pltpu


# ----------------------------------------------------------------------------
# Kernel: everything (batched linears + unrolled LSTM recurrence + head) in a
# single invocation; all operands resident in VMEM.
# ----------------------------------------------------------------------------
def policy_lstm_kernel(
    # data inputs
    sa_ref,        # (T*Bp, S+A) time-major state|last_action
    hc0_ref,       # (2*Bp, H)   rows 0:Bp = h0, Bp:2Bp = c0
    # packed weights
    w12_ref,       # (S+A, 2H)   [w1_ext | w2]
    wih_ref,       # (H, 4H)     input-side gate weights, columns i|f|g|o
    whh_ref,       # (H, 4H)     recurrent gate weights,  columns i|f|g|o
    w34_ref,       # (3H, H)     rows 0:2H = linear3, 2H:3H = linear4
    wml_ref,       # (H, 2A)     [mean | log_std] head
    bias_ref,      # (5, L)      rows: b12, b_gates, b3, b4, bml (lane-padded)
    # outputs
    ml_ref,        # (T*Bp, 2A)  [mean | log_std] (unclipped)
    hcout_ref,     # (2*Bp, H)   rows 0:Bp = h_out, Bp:2Bp = c_out
    # VMEM scratch
    xg_ref,        # (T*Bp, 4H)  input-side gate pre-activations
    merged_ref,    # (T*Bp, 2H)  [fc branch | lstm outputs]
):
    TB = sa_ref.shape[0]                 # T * Bp (time-major flattened rows)
    H = whh_ref.shape[0]
    Bp = hc0_ref.shape[0] // 2           # padded batch (multiple of 8)
    T = TB // Bp
    A2 = wml_ref.shape[1]                # 2 * ACTION_DIM

    # Bias slices (lane slices starting at 0 — cheap, hoisted).
    b12 = bias_ref[0:1, 0:2 * H]
    b_g = bias_ref[1:2, 0:4 * H]
    b3 = bias_ref[2:3, 0:H]
    b4 = bias_ref[3:4, 0:H]
    bml = bias_ref[4:5, 0:A2]

    def mm(a, w):
        return jnp.dot(a, w, preferred_element_type=jnp.float32)

    # ---- hoisted, time-independent matmuls (batched over all T*Bp rows) ----
    # fc branch (linear1) and lstm-input branch (linear2) in ONE lane-dense
    # matmul: w12 columns 0:H are linear1 (zero rows over the action columns),
    # columns H:2H are linear2 over the full state|action input.
    z = jnp.maximum(mm(sa_ref[...], w12_ref[...]) + b12, 0.0)     # (TB, 2H)
    merged_ref[:, 0:H] = z[:, 0:H]                                # fc branch
    # input-side gate pre-activations for all timesteps, gates lane-packed
    xg_ref[...] = mm(z[:, H:2 * H], wih_ref[...]) + b_g           # (TB, 4H)

    whh = whh_ref[...]                                            # (H, 4H)

    # ---- LSTM recurrence: ONE packed h @ W_hh matmul per step ----
    h = hc0_ref[0:Bp, :]                 # (Bp, H)
    c = hc0_ref[Bp:2 * Bp, :]            # (Bp, H)
    for t in range(T):                   # T static & small -> fully unrolled
        row = pl.ds(t * Bp, Bp)          # tile-aligned (multiple of 8 sublanes)
        g_all = xg_ref[row, :] + jnp.dot(h, whh,
                                         preferred_element_type=jnp.float32)
        sg = jax.nn.sigmoid(g_all)       # one EUP pass over the packed vreg
        tg = jnp.tanh(g_all)             # one EUP pass over the packed vreg
        i_g = sg[:, 0 * H:1 * H]
        f_g = sg[:, 1 * H:2 * H]
        g_g = tg[:, 2 * H:3 * H]
        o_g = sg[:, 3 * H:4 * H]
        c = f_g * c + i_g * g_g
        h = o_g * jnp.tanh(c)
        merged_ref[row, H:2 * H] = h

    hcout_ref[0:Bp, :] = h
    hcout_ref[Bp:2 * Bp, :] = c

    # ---- head, batched over all (t, b) rows ----
    w3 = w34_ref[0:2 * H, :]
    w4 = w34_ref[2 * H:3 * H, :]
    x = jnp.maximum(mm(merged_ref[...], w3) + b3, 0.0)
    x = jnp.maximum(mm(x, w4) + b4, 0.0)
    ml_ref[...] = mm(x, wml_ref[...]) + bml


# ----------------------------------------------------------------------------
# Wrapper: pad batch to sublane granularity, present inputs time-major
# flattened, call the kernel once, slice/clip/reshape results back.
# ----------------------------------------------------------------------------
@jax.jit
def policy_forward_pallas(params, state, last_action, h0, c0):
    """Equivalent of PolicyNetworkLSTM.forward.

    state:       (B, T, STATE_DIM)  float32
    last_action: (B, T, ACTION_DIM) float32
    h0, c0:      (1, B, HIDDEN)     float32
    returns (mean (B,T,A), log_std (B,T,A), (h_out (1,B,H), c_out (1,B,H)))
    """
    B, T, S = state.shape
    A = last_action.shape[-1]
    H = h0.shape[-1]
    Bp = ((B + 7) // 8) * 8              # pad batch to f32 sublane granularity
    pad = Bp - B

    # Single state|action input; concat fuses into the pad/transpose/reshape.
    sa = jnp.concatenate([state, last_action], -1)               # (B, T, S+A)
    sa_p = jnp.pad(sa, ((0, pad), (0, 0), (0, 0)))
    sa_tm = jnp.transpose(sa_p, (1, 0, 2)).reshape(T * Bp, S + A)
    hc0 = jnp.concatenate([jnp.pad(h0[0], ((0, pad), (0, 0))),
                           jnp.pad(c0[0], ((0, pad), (0, 0)))], axis=0)

    inputs = (sa_tm, hc0, params["w12"], params["wih"], params["whh"],
              params["w34"], params["wml"], params["bias"])

    def fspec(shape):
        return pl.BlockSpec(shape, lambda i: (0, 0))   # full-array resident block

    in_specs = [fspec(x.shape) for x in inputs]
    out_specs = [fspec((T * Bp, 2 * A)), fspec((2 * Bp, H))]
    out_shapes = (
        jax.ShapeDtypeStruct((T * Bp, 2 * A), jnp.float32),
        jax.ShapeDtypeStruct((2 * Bp, H), jnp.float32),
    )
    scratch_shapes = [
        pltpu.VMEM((T * Bp, 4 * H), jnp.float32),   # xg (gates lane-packed)
        pltpu.VMEM((T * Bp, 2 * H), jnp.float32),   # merged [fc | lstm_out]
    ]

    grid_spec = pltpu.PrefetchScalarGridSpec(
        num_scalar_prefetch=0,
        grid=(1,),                       # single step; recurrence is in-kernel
        in_specs=in_specs,
        out_specs=out_specs,
        scratch_shapes=scratch_shapes,
    )

    ml2, hc_fin = pl.pallas_call(
        policy_lstm_kernel,
        out_shape=out_shapes,
        grid_spec=grid_spec,
        compiler_params=pltpu.CompilerParams(
            dimension_semantics=("arbitrary",)),
    )(*inputs)

    ml = jnp.transpose(ml2.reshape(T, Bp, 2 * A)[:, :B, :], (1, 0, 2))
    mean = ml[..., :A]
    log_std = jnp.clip(ml[..., A:], -20.0, 2.0)
    h_fin = hc_fin[0:Bp][:B][None]
    c_fin = hc_fin[Bp:2 * Bp][:B][None]
    return mean, log_std, (h_fin, c_fin)


# ----------------------------------------------------------------------------
# Parameters in the original PyTorch layout + conversion to the kernel layout.
# ----------------------------------------------------------------------------
def init_params_torch_layout(key, state_dim, action_dim, hidden):
    ks = jax.random.split(key, 16)
    u = lambda k, shape, s: jax.random.uniform(k, shape, jnp.float32, -s, s)
    w = 0.1          # generic init scale
    init_w = 0.003   # module's init_w for the mean / log_std heads
    return {
        "l1_w": u(ks[0], (hidden, state_dim), w), "l1_b": u(ks[1], (hidden,), w),
        "l2_w": u(ks[2], (hidden, state_dim + action_dim), w), "l2_b": u(ks[3], (hidden,), w),
        "lstm_wih": u(ks[4], (4 * hidden, hidden), w),   # rows ordered (i, f, g, o)
        "lstm_whh": u(ks[5], (4 * hidden, hidden), w),
        "lstm_bih": u(ks[6], (4 * hidden,), w),
        "lstm_bhh": u(ks[7], (4 * hidden,), w),
        "l3_w": u(ks[8], (hidden, 2 * hidden), w), "l3_b": u(ks[9], (hidden,), w),
        "l4_w": u(ks[10], (hidden, hidden), w), "l4_b": u(ks[11], (hidden,), w),
        "mean_w": u(ks[12], (action_dim, hidden), init_w), "mean_b": u(ks[13], (action_dim,), init_w),
        "ls_w": u(ks[14], (action_dim, hidden), init_w), "ls_b": u(ks[15], (action_dim,), init_w),
    }


def convert_params(tp, state_dim, action_dim, hidden):
    """PyTorch layout -> packed kernel layout (few large operands)."""
    H, S, A = hidden, state_dim, action_dim

    # linear1 extended with zero rows over the action columns, packed next to
    # linear2 so one matmul computes both branches.
    w1_ext = jnp.concatenate(
        [tp["l1_w"].T, jnp.zeros((A, H), jnp.float32)], axis=0)     # (S+A, H)
    w12 = jnp.concatenate([w1_ext, tp["l2_w"].T], axis=1)           # (S+A, 2H)
    b12 = jnp.concatenate([tp["l1_b"], tp["l2_b"]])                 # (2H,)

    # LSTM gate packing: PyTorch rows ordered (i, f, g, o); transpose gives
    # columns ordered i|f|g|o.  Biases pre-summed (b_ih + b_hh).
    wih_pk = tp["lstm_wih"].T                                       # (H, 4H)
    whh_pk = tp["lstm_whh"].T                                       # (H, 4H)
    b_gates = tp["lstm_bih"] + tp["lstm_bhh"]                       # (4H,)

    w34 = jnp.concatenate([tp["l3_w"].T, tp["l4_w"].T], axis=0)     # (3H, H)
    wml = jnp.concatenate([tp["mean_w"].T, tp["ls_w"].T], axis=1)   # (H, 2A)
    bml = jnp.concatenate([tp["mean_b"], tp["ls_b"]])               # (2A,)

    lane = max(4 * H, 2 * H, H, 2 * A, 128)
    padrow = lambda v: jnp.pad(v, (0, lane - v.shape[0]))
    bias_pk = jnp.stack([padrow(b12), padrow(b_gates),
                         padrow(tp["l3_b"]), padrow(tp["l4_b"]),
                         padrow(bml)])                              # (5, lane)

    return {"w12": w12, "wih": wih_pk, "whh": whh_pk,
            "w34": w34, "wml": wml, "bias": bias_pk}


# ----------------------------------------------------------------------------
# Pure-JAX reference in the original (combined-weight) PyTorch formulation.
# ----------------------------------------------------------------------------
def policy_forward_ref(tp, state, last_action, h0, c0):
    H = h0.shape[-1]
    fc = jax.nn.relu(state @ tp["l1_w"].T + tp["l1_b"])
    sa = jnp.concatenate([state, last_action], -1)
    lin = jax.nn.relu(sa @ tp["l2_w"].T + tp["l2_b"])
    wih, whh = tp["lstm_wih"], tp["lstm_whh"]
    b = tp["lstm_bih"] + tp["lstm_bhh"]

    def step(carry, x_t):
        h, c = carry
        g = x_t @ wih.T + h @ whh.T + b
        i = jax.nn.sigmoid(g[:, 0 * H:1 * H])
        f = jax.nn.sigmoid(g[:, 1 * H:2 * H])
        gg = jnp.tanh(g[:, 2 * H:3 * H])
        o = jax.nn.sigmoid(g[:, 3 * H:4 * H])
        c = f * c + i * gg
        h = o * jnp.tanh(c)
        return (h, c), h

    (h_fin, c_fin), outs = jax.lax.scan(step, (h0[0], c0[0]),
                                        jnp.swapaxes(lin, 0, 1))
    lstm_out = jnp.swapaxes(outs, 0, 1)
    merged = jnp.concatenate([fc, lstm_out], -1)
    x = jax.nn.relu(merged @ tp["l3_w"].T + tp["l3_b"])
    x = jax.nn.relu(x @ tp["l4_w"].T + tp["l4_b"])
    mean = x @ tp["mean_w"].T + tp["mean_b"]
    log_std = jnp.clip(x @ tp["ls_w"].T + tp["ls_b"], -20.0, 2.0)
    return mean, log_std, (h_fin[None], c_fin[None])


if __name__ == "__main__":
    B, T = 2, 8
    STATE_DIM, ACTION_DIM, HIDDEN = 12, 3, 32

    key = jax.random.PRNGKey(0)
    kp, ks, ka, kh, kc = jax.random.split(key, 5)

    torch_params = init_params_torch_layout(kp, STATE_DIM, ACTION_DIM, HIDDEN)
    kernel_params = convert_params(torch_params, STATE_DIM, ACTION_DIM, HIDDEN)

    state = jax.random.normal(ks, (B, T, STATE_DIM), jnp.float32)
    last_action = jax.random.normal(ka, (B, T, ACTION_DIM), jnp.float32)
    h0 = jax.random.normal(kh, (1, B, HIDDEN), jnp.float32) * 0.1
    c0 = jax.random.normal(kc, (1, B, HIDDEN), jnp.float32) * 0.1

    mean, log_std, (h_out, c_out) = policy_forward_pallas(
        kernel_params, state, last_action, h0, c0)
    jax.block_until_ready((mean, log_std, h_out, c_out))

    # correctness check against a pure-JAX reference in the PyTorch layout
    mean_r, log_std_r, (h_r, c_r) = policy_forward_ref(
        torch_params, state, last_action, h0, c0)
    assert mean.shape == (B, T, ACTION_DIM) and log_std.shape == (B, T, ACTION_DIM)
    assert h_out.shape == (1, B, HIDDEN) and c_out.shape == (1, B, HIDDEN)
    assert jnp.allclose(mean, mean_r, atol=1e-4, rtol=1e-4)
    assert jnp.allclose(log_std, log_std_r, atol=1e-4, rtol=1e-4)
    assert jnp.allclose(h_out, h_r, atol=1e-4, rtol=1e-4)
    assert jnp.allclose(c_out, c_r, atol=1e-4, rtol=1e-4)

    print("KERNEL_OK")
</pallas_src>

<mosaic_0001>
module attributes {stable_mosaic.version = 11 : i64} {
  func.func @policy_lstm_kernel(%arg0: i32, %arg1: memref<64x15xf32, #tpu.memory_space<vmem>>, %arg2: memref<16x32xf32, #tpu.memory_space<vmem>>, %arg3: memref<15x64xf32, #tpu.memory_space<vmem>>, %arg4: memref<32x128xf32, #tpu.memory_space<vmem>>, %arg5: memref<32x128xf32, #tpu.memory_space<vmem>>, %arg6: memref<96x32xf32, #tpu.memory_space<vmem>>, %arg7: memref<32x6xf32, #tpu.memory_space<vmem>>, %arg8: memref<5x128xf32, #tpu.memory_space<vmem>>, %arg9: memref<64x6xf32, #tpu.memory_space<vmem>>, %arg10: memref<16x32xf32, #tpu.memory_space<vmem>>, %arg11: memref<64x128xf32, #tpu.memory_space<vmem>>, %arg12: memref<64x64xf32, #tpu.memory_space<vmem>>) attributes {dimension_semantics = [#tpu.dimension_semantics<arbitrary>], iteration_bounds = array<i64: 1>, scalar_prefetch = 0 : i64, scratch_operands = 2 : i64, tpu.core_type = #tpu.core_type<tc>, window_params = [{pipeline_mode = #tpu.pipeline_mode<synchronous>, transform_indices = @transform_0, window_bounds = array<i64: 64, 15>}, {pipeline_mode = #tpu.pipeline_mode<synchronous>, transform_indices = @transform_1, window_bounds = array<i64: 16, 32>}, {pipeline_mode = #tpu.pipeline_mode<synchronous>, transform_indices = @transform_2, window_bounds = array<i64: 15, 64>}, {pipeline_mode = #tpu.pipeline_mode<synchronous>, transform_indices = @transform_3, window_bounds = array<i64: 32, 128>}, {pipeline_mode = #tpu.pipeline_mode<synchronous>, transform_indices = @transform_4, window_bounds = array<i64: 32, 128>}, {pipeline_mode = #tpu.pipeline_mode<synchronous>, transform_indices = @transform_5, window_bounds = array<i64: 96, 32>}, {pipeline_mode = #tpu.pipeline_mode<synchronous>, transform_indices = @transform_6, window_bounds = array<i64: 32, 6>}, {pipeline_mode = #tpu.pipeline_mode<synchronous>, transform_indices = @transform_7, window_bounds = array<i64: 5, 128>}, {pipeline_mode = #tpu.pipeline_mode<synchronous>, transform_indices = @transform_8, window_bounds = array<i64: 64, 6>}, {pipeline_mode = #tpu.pipeline_mode<synchronous>, transform_indices = @transform_9, window_bounds = array<i64: 16, 32>}]} {
    %c0 = arith.constant 0 : index
    %c0_0 = arith.constant 0 : index
    %0 = vector.load %arg8[%c0, %c0_0] : memref<5x128xf32, #tpu.memory_space<vmem>>, vector<1x64xf32>
    %c1 = arith.constant 1 : index
    %c0_1 = arith.constant 0 : index
    %1 = vector.load %arg8[%c1, %c0_1] : memref<5x128xf32, #tpu.memory_space<vmem>>, vector<1x128xf32>
    %c2 = arith.constant 2 : index
    %c0_2 = arith.constant 0 : index
    %2 = vector.load %arg8[%c2, %c0_2] : memref<5x128xf32, #tpu.memory_space<vmem>>, vector<1x32xf32>
    %c3 = arith.constant 3 : index
    %c0_3 = arith.constant 0 : index
    %3 = vector.load %arg8[%c3, %c0_3] : memref<5x128xf32, #tpu.memory_space<vmem>>, vector<1x32xf32>
    %c4 = arith.constant 4 : index
    %c0_4 = arith.constant 0 : index
    %4 = vector.load %arg8[%c4, %c0_4] : memref<5x128xf32, #tpu.memory_space<vmem>>, vector<1x6xf32>
    %c0_5 = arith.constant 0 : index
    %c0_6 = arith.constant 0 : index
    %5 = vector.load %arg1[%c0_5, %c0_6] : memref<64x15xf32, #tpu.memory_space<vmem>>, vector<64x15xf32>
    %c0_7 = arith.constant 0 : index
    %c0_8 = arith.constant 0 : index
    %6 = vector.load %arg3[%c0_7, %c0_8] : memref<15x64xf32, #tpu.memory_space<vmem>>, vector<15x64xf32>
    %cst = arith.constant dense<0.000000e+00> : vector<64x64xf32>
    %7 = tpu.matmul %5, %6, %cst {dimension_numbers = #tpu.dot_dimension_numbers<[1], [0], [0], [1], [0, 0, 1, 1], [], []>} : vector<64x15xf32>, vector<15x64xf32>, vector<64x64xf32> -> vector<64x64xf32>
    %8 = vector.broadcast %0 : vector<1x64xf32> to vector<64x64xf32>
    %9 = arith.addf %7, %8 : vector<64x64xf32>
    %cst_9 = arith.constant 0.000000e+00 : f32
    %10 = vector.broadcast %cst_9 : f32 to vector<64x64xf32>
    %11 = arith.maximumf %9, %10 : vector<64x64xf32>
    %12 = vector.extract_strided_slice %11 {offsets = [0, 0], sizes = [64, 32], strides = [1, 1]} : vector<64x64xf32> to vector<64x32xf32>
    %c0_10 = arith.constant 0 : index
    %c0_11 = arith.constant 0 : index
    %13 = vector.load %arg12[%c0_10, %c0_11] : memref<64x64xf32, #tpu.memory_space<vmem>>, vector<64x32xf32>
    tpu.vector_store %arg12[%c0_10, %c0_11], %12 {strides = array<i32>} : memref<64x64xf32, #tpu.memory_space<vmem>>, vector<64x32xf32>,
    %14 = vector.extract_strided_slice %11 {offsets = [0, 32], sizes = [64, 32], strides = [1, 1]} : vector<64x64xf32> to vector<64x32xf32>
    %c0_12 = arith.constant 0 : index
    %c0_13 = arith.constant 0 : index
    %15 = vector.load %arg4[%c0_12, %c0_13] : memref<32x128xf32, #tpu.memory_space<vmem>>, vector<32x128xf32>
    %cst_14 = arith.constant dense<0.000000e+00> : vector<64x128xf32>
    %16 = tpu.matmul %14, %15, %cst_14 {dimension_numbers = #tpu.dot_dimension_numbers<[1], [0], [0], [1], [0, 0, 1, 1], [], []>} : vector<64x32xf32>, vector<32x128xf32>, vector<64x128xf32> -> vector<64x128xf32>
    %17 = vector.broadcast %1 : vector<1x128xf32> to vector<64x128xf32>
    %18 = arith.addf %16, %17 : vector<64x128xf32>
    %c0_15 = arith.constant 0 : index
    %c0_16 = arith.constant 0 : index
    %19 = vector.load %arg11[%c0_15, %c0_16] : memref<64x128xf32, #tpu.memory_space<vmem>>, vector<64x128xf32>
    tpu.vector_store %arg11[%c0_15, %c0_16], %18 {strides = array<i32>} : memref<64x128xf32, #tpu.memory_space<vmem>>, vector<64x128xf32>,
    %c0_17 = arith.constant 0 : index
    %c0_18 = arith.constant 0 : index
    %20 = vector.load %arg5[%c0_17, %c0_18] : memref<32x128xf32, #tpu.memory_space<vmem>>, vector<32x128xf32>
    %c0_19 = arith.constant 0 : index
    %c0_20 = arith.constant 0 : index
    %21 = vector.load %arg2[%c0_19, %c0_20] : memref<16x32xf32, #tpu.memory_space<vmem>>, vector<8x32xf32>
    %c8 = arith.constant 8 : index
    %c0_21 = arith.constant 0 : index
    %22 = vector.load %arg2[%c8, %c0_21] : memref<16x32xf32, #tpu.memory_space<vmem>>, vector<8x32xf32>
    %c0_22 = arith.constant 0 : index
    %c0_23 = arith.constant 0 : index
    %23 = vector.load %arg11[%c0_22, %c0_23] : memref<64x128xf32, #tpu.memory_space<vmem>>, vector<8x128xf32>
    %cst_24 = arith.constant dense<0.000000e+00> : vector<8x128xf32>
    %24 = tpu.matmul %21, %20, %cst_24 {dimension_numbers = #tpu.dot_dimension_numbers<[1], [0], [0], [1], [0, 0, 1, 1], [], []>} : vector<8x32xf32>, vector<32x128xf32>, vector<8x128xf32> -> vector<8x128xf32>
    %25 = arith.addf %23, %24 : vector<8x128xf32>
    %26 = arith.negf %25 : vector<8x128xf32>
    %27 = math.exp %26 : vector<8x128xf32>
    %cst_25 = arith.constant 1.000000e+00 : f32
    %28 = vector.broadcast %cst_25 : f32 to vector<8x128xf32>
    %29 = arith.addf %28, %27 : vector<8x128xf32>
    %30 = arith.divf %28, %29 : vector<8x128xf32>
    %31 = math.tanh %25 : vector<8x128xf32>
    %32 = vector.extract_strided_slice %30 {offsets = [0, 0], sizes = [8, 32], strides = [1, 1]} : vector<8x128xf32> to vector<8x32xf32>
    %33 = vector.extract_strided_slice %30 {offsets = [0, 32], sizes = [8, 32], strides = [1, 1]} : vector<8x128xf32> to vector<8x32xf32>
    %34 = vector.extract_strided_slice %31 {offsets = [0, 64], sizes = [8, 32], strides = [1, 1]} : vector<8x128xf32> to vector<8x32xf32>
    %35 = vector.extract_strided_slice %30 {offsets = [0, 96], sizes = [8, 32], strides = [1, 1]} : vector<8x128xf32> to vector<8x32xf32>
    %36 = arith.mulf %33, %22 : vector<8x32xf32>
    %37 = arith.mulf %32, %34 : vector<8x32xf32>
    %38 = arith.addf %36, %37 : vector<8x32xf32>
    %39 = math.tanh %38 : vector<8x32xf32>
    %40 = arith.mulf %35, %39 : vector<8x32xf32>
    %c0_26 = arith.constant 0 : index
    %c32 = arith.constant 32 : index
    %41 = vector.load %arg12[%c0_26, %c32] : memref<64x64xf32, #tpu.memory_space<vmem>>, vector<8x32xf32>
    tpu.vector_store %arg12[%c0_26, %c32], %40 {strides = array<i32>} : memref<64x64xf32, #tpu.memory_space<vmem>>, vector<8x32xf32>,
    %c8_27 = arith.constant 8 : index
    %c0_28 = arith.constant 0 : index
    %42 = vector.load %arg11[%c8_27, %c0_28] : memref<64x128xf32, #tpu.memory_space<vmem>>, vector<8x128xf32>
    %cst_29 = arith.constant dense<0.000000e+00> : vector<8x128xf32>
    %43 = tpu.matmul %40, %20, %cst_29 {dimension_numbers = #tpu.dot_dimension_numbers<[1], [0], [0], [1], [0, 0, 1, 1], [], []>} : vector<8x32xf32>, vector<32x128xf32>, vector<8x128xf32> -> vector<8x128xf32>
    %44 = arith.addf %42, %43 : vector<8x128xf32>
    %45 = arith.negf %44 : vector<8x128xf32>
    %46 = math.exp %45 : vector<8x128xf32>
    %cst_30 = arith.constant 1.000000e+00 : f32
    %47 = vector.broadcast %cst_30 : f32 to vector<8x128xf32>
    %48 = arith.addf %47, %46 : vector<8x128xf32>
    %49 = arith.divf %47, %48 : vector<8x128xf32>
    %50 = math.tanh %44 : vector<8x128xf32>
    %51 = vector.extract_strided_slice %49 {offsets = [0, 0], sizes = [8, 32], strides = [1, 1]} : vector<8x128xf32> to vector<8x32xf32>
    %52 = vector.extract_strided_slice %49 {offsets = [0, 32], sizes = [8, 32], strides = [1, 1]} : vector<8x128xf32> to vector<8x32xf32>
    %53 = vector.extract_strided_slice %50 {offsets = [0, 64], sizes = [8, 32], strides = [1, 1]} : vector<8x128xf32> to vector<8x32xf32>
    %54 = vector.extract_strided_slice %49 {offsets = [0, 96], sizes = [8, 32], strides = [1, 1]} : vector<8x128xf32> to vector<8x32xf32>
    %55 = arith.mulf %52, %38 : vector<8x32xf32>
    %56 = arith.mulf %51, %53 : vector<8x32xf32>
    %57 = arith.addf %55, %56 : vector<8x32xf32>
    %58 = math.tanh %57 : vector<8x32xf32>
    %59 = arith.mulf %54, %58 : vector<8x32xf32>
    %c8_31 = arith.constant 8 : index
    %c32_32 = arith.constant 32 : index
    %60 = vector.load %arg12[%c8_31, %c32_32] : memref<64x64xf32, #tpu.memory_space<vmem>>, vector<8x32xf32>
    tpu.vector_store %arg12[%c8_31, %c32_32], %59 {strides = array<i32>} : memref<64x64xf32, #tpu.memory_space<vmem>>, vector<8x32xf32>,
    %c16 = arith.constant 16 : index
    %c0_33 = arith.constant 0 : index
    %61 = vector.load %arg11[%c16, %c0_33] : memref<64x128xf32, #tpu.memory_space<vmem>>, vector<8x128xf32>
    %cst_34 = arith.constant dense<0.000000e+00> : vector<8x128xf32>
    %62 = tpu.matmul %59, %20, %cst_34 {dimension_numbers = #tpu.dot_dimension_numbers<[1], [0], [0], [1], [0, 0, 1, 1], [], []>} : vector<8x32xf32>, vector<32x128xf32>, vector<8x128xf32> -> vector<8x128xf32>
    %63 = arith.addf %61, %62 : vector<8x128xf32>
    %64 = arith.negf %63 : vector<8x128xf32>
    %65 = math.exp %64 : vector<8x128xf32>
    %cst_35 = arith.constant 1.000000e+00 : f32
    %66 = vector.broadcast %cst_35 : f32 to vector<8x128xf32>
    %67 = arith.addf %66, %65 : vector<8x128xf32>
    %68 = arith.divf %66, %67 : vector<8x128xf32>
    %69 = math.tanh %63 : vector<8x128xf32>
    %70 = vector.extract_strided_slice %68 {offsets = [0, 0], sizes = [8, 32], strides = [1, 1]} : vector<8x128xf32> to vector<8x32xf32>
    %71 = vector.extract_strided_slice %68 {offsets = [0, 32], sizes = [8, 32], strides = [1, 1]} : vector<8x128xf32> to vector<8x32xf32>
    %72 = vector.extract_strided_slice %69 {offsets = [0, 64], sizes = [8, 32], strides = [1, 1]} : vector<8x128xf32> to vector<8x32xf32>
    %73 = vector.extract_strided_slice %68 {offsets = [0, 96], sizes = [8, 32], strides = [1, 1]} : vector<8x128xf32> to vector<8x32xf32>
    %74 = arith.mulf %71, %57 : vector<8x32xf32>
    %75 = arith.mulf %70, %72 : vector<8x32xf32>
    %76 = arith.addf %74, %75 : vector<8x32xf32>
    %77 = math.tanh %76 : vector<8x32xf32>
    %78 = arith.mulf %73, %77 : vector<8x32xf32>
    %c16_36 = arith.constant 16 : index
    %c32_37 = arith.constant 32 : index
    %79 = vector.load %arg12[%c16_36, %c32_37] : memref<64x64xf32, #tpu.memory_space<vmem>>, vector<8x32xf32>
    tpu.vector_store %arg12[%c16_36, %c32_37], %78 {strides = array<i32>} : memref<64x64xf32, #tpu.memory_space<vmem>>, vector<8x32xf32>,
    %c24 = arith.constant 24 : index
    %c0_38 = arith.constant 0 : index
    %80 = vector.load %arg11[%c24, %c0_38] : memref<64x128xf32, #tpu.memory_space<vmem>>, vector<8x128xf32>
    %cst_39 = arith.constant dense<0.000000e+00> : vector<8x128xf32>
    %81 = tpu.matmul %78, %20, %cst_39 {dimension_numbers = #tpu.dot_dimension_numbers<[1], [0], [0], [1], [0, 0, 1, 1], [], []>} : vector<8x32xf32>, vector<32x128xf32>, vector<8x128xf32> -> vector<8x128xf32>
    %82 = arith.addf %80, %81 : vector<8x128xf32>
    %83 = arith.negf %82 : vector<8x128xf32>
    %84 = math.exp %83 : vector<8x128xf32>
    %cst_40 = arith.constant 1.000000e+00 : f32
    %85 = vector.broadcast %cst_40 : f32 to vector<8x128xf32>
    %86 = arith.addf %85, %84 : vector<8x128xf32>
    %87 = arith.divf %85, %86 : vector<8x128xf32>
    %88 = math.tanh %82 : vector<8x128xf32>
    %89 = vector.extract_strided_slice %87 {offsets = [0, 0], sizes = [8, 32], strides = [1, 1]} : vector<8x128xf32> to vector<8x32xf32>
    %90 = vector.extract_strided_slice %87 {offsets = [0, 32], sizes = [8, 32], strides = [1, 1]} : vector<8x128xf32> to vector<8x32xf32>
    %91 = vector.extract_strided_slice %88 {offsets = [0, 64], sizes = [8, 32], strides = [1, 1]} : vector<8x128xf32> to vector<8x32xf32>
    %92 = vector.extract_strided_slice %87 {offsets = [0, 96], sizes = [8, 32], strides = [1, 1]} : vector<8x128xf32> to vector<8x32xf32>
    %93 = arith.mulf %90, %76 : vector<8x32xf32>
    %94 = arith.mulf %89, %91 : vector<8x32xf32>
    %95 = arith.addf %93, %94 : vector<8x32xf32>
    %96 = math.tanh %95 : vector<8x32xf32>
    %97 = arith.mulf %92, %96 : vector<8x32xf32>
    %c24_41 = arith.constant 24 : index
    %c32_42 = arith.constant 32 : index
    %98 = vector.load %arg12[%c24_41, %c32_42] : memref<64x64xf32, #tpu.memory_space<vmem>>, vector<8x32xf32>
    tpu.vector_store %arg12[%c24_41, %c32_42], %97 {strides = array<i32>} : memref<64x64xf32, #tpu.memory_space<vmem>>, vector<8x32xf32>,
    %c32_43 = arith.constant 32 : index
    %c0_44 = arith.constant 0 : index
    %99 = vector.load %arg11[%c32_43, %c0_44] : memref<64x128xf32, #tpu.memory_space<vmem>>, vector<8x128xf32>
    %cst_45 = arith.constant dense<0.000000e+00> : vector<8x128xf32>
    %100 = tpu.matmul %97, %20, %cst_45 {dimension_numbers = #tpu.dot_dimension_numbers<[1], [0], [0], [1], [0, 0, 1, 1], [], []>} : vector<8x32xf32>, vector<32x128xf32>, vector<8x128xf32> -> vector<8x128xf32>
    %101 = arith.addf %99, %100 : vector<8x128xf32>
    %102 = arith.negf %101 : vector<8x128xf32>
    %103 = math.exp %102 : vector<8x128xf32>
    %cst_46 = arith.constant 1.000000e+00 : f32
    %104 = vector.broadcast %cst_46 : f32 to vector<8x128xf32>
    %105 = arith.addf %104, %103 : vector<8x128xf32>
    %106 = arith.divf %104, %105 : vector<8x128xf32>
    %107 = math.tanh %101 : vector<8x128xf32>
    %108 = vector.extract_strided_slice %106 {offsets = [0, 0], sizes = [8, 32], strides = [1, 1]} : vector<8x128xf32> to vector<8x32xf32>
    %109 = vector.extract_strided_slice %106 {offsets = [0, 32], sizes = [8, 32], strides = [1, 1]} : vector<8x128xf32> to vector<8x32xf32>
    %110 = vector.extract_strided_slice %107 {offsets = [0, 64], sizes = [8, 32], strides = [1, 1]} : vector<8x128xf32> to vector<8x32xf32>
    %111 = vector.extract_strided_slice %106 {offsets = [0, 96], sizes = [8, 32], strides = [1, 1]} : vector<8x128xf32> to vector<8x32xf32>
    %112 = arith.mulf %109, %95 : vector<8x32xf32>
    %113 = arith.mulf %108, %110 : vector<8x32xf32>
    %114 = arith.addf %112, %113 : vector<8x32xf32>
    %115 = math.tanh %114 : vector<8x32xf32>
    %116 = arith.mulf %111, %115 : vector<8x32xf32>
    %c32_47 = arith.constant 32 : index
    %c32_48 = arith.constant 32 : index
    %117 = vector.load %arg12[%c32_47, %c32_48] : memref<64x64xf32, #tpu.memory_space<vmem>>, vector<8x32xf32>
    tpu.vector_store %arg12[%c32_47, %c32_48], %116 {strides = array<i32>} : memref<64x64xf32, #tpu.memory_space<vmem>>, vector<8x32xf32>,
    %c40 = arith.constant 40 : index
    %c0_49 = arith.constant 0 : index
    %118 = vector.load %arg11[%c40, %c0_49] : memref<64x128xf32, #tpu.memory_space<vmem>>, vector<8x128xf32>
    %cst_50 = arith.constant dense<0.000000e+00> : vector<8x128xf32>
    %119 = tpu.matmul %116, %20, %cst_50 {dimension_numbers = #tpu.dot_dimension_numbers<[1], [0], [0], [1], [0, 0, 1, 1], [], []>} : vector<8x32xf32>, vector<32x128xf32>, vector<8x128xf32> -> vector<8x128xf32>
    %120 = arith.addf %118, %119 : vector<8x128xf32>
    %121 = arith.negf %120 : vector<8x128xf32>
    %122 = math.exp %121 : vector<8x128xf32>
    %cst_51 = arith.constant 1.000000e+00 : f32
    %123 = vector.broadcast %cst_51 : f32 to vector<8x128xf32>
    %124 = arith.addf %123, %122 : vector<8x128xf32>
    %125 = arith.divf %123, %124 : vector<8x128xf32>
    %126 = math.tanh %120 : vector<8x128xf32>
    %127 = vector.extract_strided_slice %125 {offsets = [0, 0], sizes = [8, 32], strides = [1, 1]} : vector<8x128xf32> to vector<8x32xf32>
    %128 = vector.extract_strided_slice %125 {offsets = [0, 32], sizes = [8, 32], strides = [1, 1]} : vector<8x128xf32> to vector<8x32xf32>
    %129 = vector.extract_strided_slice %126 {offsets = [0, 64], sizes = [8, 32], strides = [1, 1]} : vector<8x128xf32> to vector<8x32xf32>
    %130 = vector.extract_strided_slice %125 {offsets = [0, 96], sizes = [8, 32], strides = [1, 1]} : vector<8x128xf32> to vector<8x32xf32>
    %131 = arith.mulf %128, %114 : vector<8x32xf32>
    %132 = arith.mulf %127, %129 : vector<8x32xf32>
    %133 = arith.addf %131, %132 : vector<8x32xf32>
    %134 = math.tanh %133 : vector<8x32xf32>
    %135 = arith.mulf %130, %134 : vector<8x32xf32>
    %c40_52 = arith.constant 40 : index
    %c32_53 = arith.constant 32 : index
    %136 = vector.load %arg12[%c40_52, %c32_53] : memref<64x64xf32, #tpu.memory_space<vmem>>, vector<8x32xf32>
    tpu.vector_store %arg12[%c40_52, %c32_53], %135 {strides = array<i32>} : memref<64x64xf32, #tpu.memory_space<vmem>>, vector<8x32xf32>,
    %c48 = arith.constant 48 : index
    %c0_54 = arith.constant 0 : index
    %137 = vector.load %arg11[%c48, %c0_54] : memref<64x128xf32, #tpu.memory_space<vmem>>, vector<8x128xf32>
    %cst_55 = arith.constant dense<0.000000e+00> : vector<8x128xf32>
    %138 = tpu.matmul %135, %20, %cst_55 {dimension_numbers = #tpu.dot_dimension_numbers<[1], [0], [0], [1], [0, 0, 1, 1], [], []>} : vector<8x32xf32>, vector<32x128xf32>, vector<8x128xf32> -> vector<8x128xf32>
    %139 = arith.addf %137, %138 : vector<8x128xf32>
    %140 = arith.negf %139 : vector<8x128xf32>
    %141 = math.exp %140 : vector<8x128xf32>
    %cst_56 = arith.constant 1.000000e+00 : f32
    %142 = vector.broadcast %cst_56 : f32 to vector<8x128xf32>
    %143 = arith.addf %142, %141 : vector<8x128xf32>
    %144 = arith.divf %142, %143 : vector<8x128xf32>
    %145 = math.tanh %139 : vector<8x128xf32>
    %146 = vector.extract_strided_slice %144 {offsets = [0, 0], sizes = [8, 32], strides = [1, 1]} : vector<8x128xf32> to vector<8x32xf32>
    %147 = vector.extract_strided_slice %144 {offsets = [0, 32], sizes = [8, 32], strides = [1, 1]} : vector<8x128xf32> to vector<8x32xf32>
    %148 = vector.extract_strided_slice %145 {offsets = [0, 64], sizes = [8, 32], strides = [1, 1]} : vector<8x128xf32> to vector<8x32xf32>
    %149 = vector.extract_strided_slice %144 {offsets = [0, 96], sizes = [8, 32], strides = [1, 1]} : vector<8x128xf32> to vector<8x32xf32>
    %150 = arith.mulf %147, %133 : vector<8x32xf32>
    %151 = arith.mulf %146, %148 : vector<8x32xf32>
    %152 = arith.addf %150, %151 : vector<8x32xf32>
    %153 = math.tanh %152 : vector<8x32xf32>
    %154 = arith.mulf %149, %153 : vector<8x32xf32>
    %c48_57 = arith.constant 48 : index
    %c32_58 = arith.constant 32 : index
    %155 = vector.load %arg12[%c48_57, %c32_58] : memref<64x64xf32, #tpu.memory_space<vmem>>, vector<8x32xf32>
    tpu.vector_store %arg12[%c48_57, %c32_58], %154 {strides = array<i32>} : memref<64x64xf32, #tpu.memory_space<vmem>>, vector<8x32xf32>,
    %c56 = arith.constant 56 : index
    %c0_59 = arith.constant 0 : index
    %156 = vector.load %arg11[%c56, %c0_59] : memref<64x128xf32, #tpu.memory_space<vmem>>, vector<8x128xf32>
    %cst_60 = arith.constant dense<0.000000e+00> : vector<8x128xf32>
    %157 = tpu.matmul %154, %20, %cst_60 {dimension_numbers = #tpu.dot_dimension_numbers<[1], [0], [0], [1], [0, 0, 1, 1], [], []>} : vector<8x32xf32>, vector<32x128xf32>, vector<8x128xf32> -> vector<8x128xf32>
    %158 = arith.addf %156, %157 : vector<8x128xf32>
    %159 = arith.negf %158 : vector<8x128xf32>
    %160 = math.exp %159 : vector<8x128xf32>
    %cst_61 = arith.constant 1.000000e+00 : f32
    %161 = vector.broadcast %cst_61 : f32 to vector<8x128xf32>
    %162 = arith.addf %161, %160 : vector<8x128xf32>
    %163 = arith.divf %161, %162 : vector<8x128xf32>
    %164 = math.tanh %158 : vector<8x128xf32>
    %165 = vector.extract_strided_slice %163 {offsets = [0, 0], sizes = [8, 32], strides = [1, 1]} : vector<8x128xf32> to vector<8x32xf32>
    %166 = vector.extract_strided_slice %163 {offsets = [0, 32], sizes = [8, 32], strides = [1, 1]} : vector<8x128xf32> to vector<8x32xf32>
    %167 = vector.extract_strided_slice %164 {offsets = [0, 64], sizes = [8, 32], strides = [1, 1]} : vector<8x128xf32> to vector<8x32xf32>
    %168 = vector.extract_strided_slice %163 {offsets = [0, 96], sizes = [8, 32], strides = [1, 1]} : vector<8x128xf32> to vector<8x32xf32>
    %169 = arith.mulf %166, %152 : vector<8x32xf32>
    %170 = arith.mulf %165, %167 : vector<8x32xf32>
    %171 = arith.addf %169, %170 : vector<8x32xf32>
    %172 = math.tanh %171 : vector<8x32xf32>
    %173 = arith.mulf %168, %172 : vector<8x32xf32>
    %c56_62 = arith.constant 56 : index
    %c32_63 = arith.constant 32 : index
    %174 = vector.load %arg12[%c56_62, %c32_63] : memref<64x64xf32, #tpu.memory_space<vmem>>, vector<8x32xf32>
    tpu.vector_store %arg12[%c56_62, %c32_63], %173 {strides = array<i32>} : memref<64x64xf32, #tpu.memory_space<vmem>>, vector<8x32xf32>,
    %c0_64 = arith.constant 0 : index
    %c0_65 = arith.constant 0 : index
    %175 = vector.load %arg10[%c0_64, %c0_65] : memref<16x32xf32, #tpu.memory_space<vmem>>, vector<8x32xf32>
    tpu.vector_store %arg10[%c0_64, %c0_65], %173 {strides = array<i32>} : memref<16x32xf32, #tpu.memory_space<vmem>>, vector<8x32xf32>,
    %c8_66 = arith.constant 8 : index
    %c0_67 = arith.constant 0 : index
    %176 = vector.load %arg10[%c8_66, %c0_67] : memref<16x32xf32, #tpu.memory_space<vmem>>, vector<8x32xf32>
    tpu.vector_store %arg10[%c8_66, %c0_67], %171 {strides = array<i32>} : memref<16x32xf32, #tpu.memory_space<vmem>>, vector<8x32xf32>,
    %c0_68 = arith.constant 0 : index
    %c0_69 = arith.constant 0 : index
    %177 = vector.load %arg6[%c0_68, %c0_69] : memref<96x32xf32, #tpu.memory_space<vmem>>, vector<64x32xf32>
    %c64 = arith.constant 64 : index
    %c0_70 = arith.constant 0 : index
    %178 = vector.load %arg6[%c64, %c0_70] : memref<96x32xf32, #tpu.memory_space<vmem>>, vector<32x32xf32>
    %c0_71 = arith.constant 0 : index
    %c0_72 = arith.constant 0 : index
    %179 = vector.load %arg12[%c0_71, %c0_72] : memref<64x64xf32, #tpu.memory_space<vmem>>, vector<64x64xf32>
    %cst_73 = arith.constant dense<0.000000e+00> : vector<64x32xf32>
    %180 = tpu.matmul %179, %177, %cst_73 {dimension_numbers = #tpu.dot_dimension_numbers<[1], [0], [0], [1], [0, 0, 1, 1], [], []>} : vector<64x64xf32>, vector<64x32xf32>, vector<64x32xf32> -> vector<64x32xf32>
    %181 = vector.broadcast %2 : vector<1x32xf32> to vector<64x32xf32>
    %182 = arith.addf %180, %181 : vector<64x32xf32>
    %cst_74 = arith.constant 0.000000e+00 : f32
    %183 = vector.broadcast %cst_74 : f32 to vector<64x32xf32>
    %184 = arith.maximumf %182, %183 : vector<64x32xf32>
    %cst_75 = arith.constant dense<0.000000e+00> : vector<64x32xf32>
    %185 = tpu.matmul %184, %178, %cst_75 {dimension_numbers = #tpu.dot_dimension_numbers<[1], [0], [0], [1], [0, 0, 1, 1], [], []>} : vector<64x32xf32>, vector<32x32xf32>, vector<64x32xf32> -> vector<64x32xf32>
    %186 = vector.broadcast %3 : vector<1x32xf32> to vector<64x32xf32>
    %187 = arith.addf %185, %186 : vector<64x32xf32>
    %cst_76 = arith.constant 0.000000e+00 : f32
    %188 = vector.broadcast %cst_76 : f32 to vector<64x32xf32>
    %189 = arith.maximumf %187, %188 : vector<64x32xf32>
    %c0_77 = arith.constant 0 : index
    %c0_78 = arith.constant 0 : index
    %190 = vector.load %arg7[%c0_77, %c0_78] : memref<32x6xf32, #tpu.memory_space<vmem>>, vector<32x6xf32>
    %cst_79 = arith.constant dense<0.000000e+00> : vector<64x6xf32>
    %191 = tpu.matmul %189, %190, %cst_79 {dimension_numbers = #tpu.dot_dimension_numbers<[1], [0], [0], [1], [0, 0, 1, 1], [], []>} : vector<64x32xf32>, vector<32x6xf32>, vector<64x6xf32> -> vector<64x6xf32>
    %192 = vector.broadcast %4 : vector<1x6xf32> to vector<64x6xf32>
    %193 = arith.addf %191, %192 : vector<64x6xf32>
    %c0_80 = arith.constant 0 : index
    %c0_81 = arith.constant 0 : index
    %194 = vector.load %arg9[%c0_80, %c0_81] : memref<64x6xf32, #tpu.memory_space<vmem>>, vector<64x6xf32>
    tpu.vector_store %arg9[%c0_80, %c0_81], %193 {strides = array<i32>} : memref<64x6xf32, #tpu.memory_space<vmem>>, vector<64x6xf32>,
    return
  }
  func.func @transform_0(%arg0: i32) -> (i32, i32) {
    %c0_i32 = arith.constant 0 : i32
    %c0_i32_0 = arith.constant 0 : i32
    %c0_i32_1 = arith.constant 0 : i32
    return %c0_i32, %c0_i32_0 : i32, i32
  }
  func.func @transform_1(%arg0: i32) -> (i32, i32) {
    %c0_i32 = arith.constant 0 : i32
    %c0_i32_0 = arith.constant 0 : i32
    %c0_i32_1 = arith.constant 0 : i32
    return %c0_i32, %c0_i32_0 : i32, i32
  }
  func.func @transform_2(%arg0: i32) -> (i32, i32) {
    %c0_i32 = arith.constant 0 : i32
    %c0_i32_0 = arith.constant 0 : i32
    %c0_i32_1 = arith.constant 0 : i32
    return %c0_i32, %c0_i32_0 : i32, i32
  }
  func.func @transform_3(%arg0: i32) -> (i32, i32) {
    %c0_i32 = arith.constant 0 : i32
    %c0_i32_0 = arith.constant 0 : i32
    %c0_i32_1 = arith.constant 0 : i32
    return %c0_i32, %c0_i32_0 : i32, i32
  }
  func.func @transform_4(%arg0: i32) -> (i32, i32) {
    %c0_i32 = arith.constant 0 : i32
    %c0_i32_0 = arith.constant 0 : i32
    %c0_i32_1 = arith.constant 0 : i32
    return %c0_i32, %c0_i32_0 : i32, i32
  }
  func.func @transform_5(%arg0: i32) -> (i32, i32) {
    %c0_i32 = arith.constant 0 : i32
    %c0_i32_0 = arith.constant 0 : i32
    %c0_i32_1 = arith.constant 0 : i32
    return %c0_i32, %c0_i32_0 : i32, i32
  }
  func.func @transform_6(%arg0: i32) -> (i32, i32) {
    %c0_i32 = arith.constant 0 : i32
    %c0_i32_0 = arith.constant 0 : i32
    %c0_i32_1 = arith.constant 0 : i32
    return %c0_i32, %c0_i32_0 : i32, i32
  }
  func.func @transform_7(%arg0: i32) -> (i32, i32) {
    %c0_i32 = arith.constant 0 : i32
    %c0_i32_0 = arith.constant 0 : i32
    %c0_i32_1 = arith.constant 0 : i32
    return %c0_i32, %c0_i32_0 : i32, i32
  }
  func.func @transform_8(%arg0: i32) -> (i32, i32) {
    %c0_i32 = arith.constant 0 : i32
    %c0_i32_0 = arith.constant 0 : i32
    %c0_i32_1 = arith.constant 0 : i32
    return %c0_i32, %c0_i32_0 : i32, i32
  }
  func.func @transform_9(%arg0: i32) -> (i32, i32) {
    %c0_i32 = arith.constant 0 : i32
    %c0_i32_0 = arith.constant 0 : i32
    %c0_i32_1 = arith.constant 0 : i32
    return %c0_i32, %c0_i32_0 : i32, i32
  }
}

</mosaic_0001>

<bundles_post_ra>
// kernel: policy_forward_pallas.1
= control target key start
LH: loop header
LB: loop body
LE: loop exit
PB: predicated region body
PF: predicated region fallthrough
CT: control target
= control target key end

     0   :  { %vm75_vm0 = vcmask 1046528   ;;  %vm50_vm1 = vcmask 121856   ;;  %vm2203_vm2 = vmmov 1   ;;  %v2204_v17 = vmov 0.0|0.0   ;;  %s2206_s18 = smov 32   ;;  %s2658_s2 = inlined_call_operand.vmem [shape: f32[15,64], index: 2, kind: input, shape index: {}]   ;;  %s2659_s0 = inlined_call_operand.vmem [shape: f32[64,15], index: 0, kind: input, shape index: {}]   ;;  %s2660_s3 = inlined_call_operand.vmem [shape: f32[32,128], index: 3, kind: input, shape index: {}]   ;;  %s2661_s7 = inlined_call_operand.vmem [shape: f32[5,128], index: 7, kind: input, shape index: {}]   ;;  %s2662_s1 = inlined_call_operand.vmem [shape: f32[16,32], index: 1, kind: input, shape index: {}]   ;;  %s2663_s4 = inlined_call_operand.vmem [shape: f32[32,128], index: 4, kind: input, shape index: {}]   ;;  %s2664_s5 = inlined_call_operand.vmem [shape: f32[96,32], index: 5, kind: input, shape index: {}]   ;;  %s2665_s9 = inlined_call_operand.vmem [shape: f32[16,32], index: 9, kind: output, shape index: {1}]   ;;  %s2666_s6 = inlined_call_operand.vmem [shape: f32[32,6], index: 6, kind: input, shape index: {}]   ;;  %s2667_s8 = inlined_call_operand.vmem [shape: f32[64,6], index: 8, kind: output, shape index: {0}]  }
   0x1   :  { %v44_v0 = vld [vmem:[%s2658_s2] sm:$0xff]  ;;  %v45_v1 = vld [vmem:[%s2658_s2 + $0x8] sm:$0x7f]  ;;  %vm2035_vm3 = vmpackc.low %vm75_vm0, %vm2203_vm2  ;;  %vm192_vm4 = vcmask 261120   ;;  %vm2207_vm5 = vmmov 0   ;;  %v2208_v54 = vmov 0.0  }
   0x2   :  { %v2034_v2 = vpack.c.bf16 %v45_v1, %v44_v0  ;;  %v36_v3 = vld [vmem:[%s2659_s0] sm:$0xff]  ;;  %v37_v4 = vld [vmem:[%s2659_s0 + $0x8] sm:$0xff]  ;;  %v38_v5 = vld [vmem:[%s2659_s0 + $0x10] sm:$0xff]  ;;  %vm475_vm6 = vcmask 523520   ;;  %vm1245_vm7 = vcmask 523264   ;;  %vm1661_vm8 = vcmask 48128  }
   0x3   :  { %1846 = vmatprep.mubr.msk.f32.mxu0 %vm50_vm1, %v36_v3  ;;  %v39_v6 = vld [vmem:[%s2659_s0 + $0x18] sm:$0xff]  ;;  %v40_v7 = vld [vmem:[%s2659_s0 + $0x20] sm:$0xff]  ;;  %v41_v8 = vld [vmem:[%s2659_s0 + $0x28] sm:$0xff] }
   0x4   :  { %2036 = vmatprep.subr.msk.bf16.mxu0 %vm2035_vm3, %v2034_v2  ;;  %v42_v9 = vld [vmem:[%s2659_s0 + $0x30] sm:$0xff]  ;;  %v201_v10 = vld [vmem:[%s2660_s3] sm:$0xff]  ;;  %v202_v11 = vld [vmem:[%s2660_s3 + $0x8] sm:$0xff] }
   0x5   :  { %2039 = vmatpush3.bf16.msk.msra.mxu0 %vm2035_vm3, %v2034_v2  ;;  %v203_v12 = vld [vmem:[%s2660_s3 + $0x10] sm:$0xff]  ;;  %v2040_v13 = vpack.c.bf16 %v202_v11, %v201_v10  ;;  %v204_v14 = vld [vmem:[%s2660_s3 + $0x18] sm:$0xff]  ;;  %v1678_v18 = vld [vmem:[%s2661_s7] ss:$0 sm:$0xff] }
   0x6   :  { %v2044_v15 = vpack.c.bf16 %v204_v14, %v203_v12  ;;  %v43_v16 = vld [vmem:[%s2659_s0 + $0x38] sm:$0xff]  ;;  %s2205_s0 = smov 96   ;;  %v367_v31 = vld [vmem:[%s2662_s1 + $0x8] sm:$0xff]  ;;  %v362_v44 = vld [vmem:[%s2663_s4] sm:$0xff] }
   0x7   :  { %2041 = vmatprep.subr.bf16.mxu0 %v2040_v13  ;;  %2128 = vmatprep.subr.bf16.mxu1 %v2040_v13  ;;  %v363_v45 = vld [vmem:[%s2663_s4 + $0x8] sm:$0xff]  ;;  %v364_v48 = vld [vmem:[%s2663_s4 + $0x10] sm:$0xff]  ;;  %v365_v49 = vld [vmem:[%s2663_s4 + $0x18] sm:$0xff] }
   0x8   :  { %1847 = vmatmul.mubr.msk.f32.vlgmr.msra.gmra.mrb[0].mxu0 %vm50_vm1, %v37_v4  ;;  %2130 = vmatpush3.bf16.msra.mxu1 %v2040_v13  ;;  %v2351_v47 = vpack.c.bf16 %v363_v45, %v362_v44  ;;  %v2362_v52 = vpack.c.bf16 %v365_v49, %v364_v48  ;;  %v366_v55 = vld [vmem:[%s2662_s1] sm:$0xff]  ;;  %s2209_s1 = smov 64  }
   0x9   :  { %1849 = vmatprep.mubr.msk.f32.mxu0 %vm50_vm1, %v38_v5  ;;  %2043 = vmatpush3.bf16.msra.mxu0 %v2040_v13  ;;  %v2383_v58 = vld [vmem:[%s2661_s7 + $0x1] ss:$0 sm:$0xff] }
   0xa   :  { %2045 = vmatprep.subr.bf16.mxu0 %v2044_v15  ;;  %2129 = vmatprep.subr.bf16.mxu1 %v2044_v15 }
   0xc   :  { %1850 = vmatmul.mubr.msk.f32.gmra.mrb[2].mxu0 %vm50_vm1, %v39_v6  ;;  %2131 = vmatpush3.bf16.msra.mxu1 %v2044_v15 }
   0xd   :  { %1852 = vmatprep.mubr.msk.f32.mxu0 %vm50_vm1, %v40_v7  ;;  %2047 = vmatpush3.bf16.msra.mxu0 %v2044_v15 }
   0xe   :  { %2048 = vmatprep.subr.bf16.mxu0 %v2204_v17  ;;  %2054 = vmatprep.subr.bf16.mxu1 %v2204_v17 }
  0x10   :  { %1853 = vmatmul.mubr.msk.f32.gmra.mrb[4].mxu0 %vm50_vm1, %v41_v8 }
  0x11   :  { %1855 = vmatprep.mubr.msk.f32.mxu0 %vm50_vm1, %v42_v9 }
  0x14   :  { %1856 = vmatmul.mubr.msk.f32.gmra.mrb[6].mxu0 %vm50_vm1, %v43_v16 }
  0xdb   :  { %v1848_v19 = vpop.f32.mrb[0].mxu0 }
  0xdc   :  { %v151_v20 = vadd.f32 %v1848_v19, %v1678_v18  ;;  %v145_v21 = vpop.f32.mrb[1].mxu0 }
  0xdd   :  { %v146_v22 = vadd.f32 %v1678_v18, %v145_v21 }
  0xde   :  { %v185_v23 = vmax.f32 %v151_v20, 0.0 }
  0xdf   :  { %v184_v24 = vmax.f32 %v146_v22, 0.0  ;;  %v1851_v25 = vpop.f32.mrb[2].mxu0 }
  0xe0   :  { %194 = vst.msk [vmem:[#allocation3 + $0x8] sm:$0xff] %vm192_vm4, %v185_v23  ;;  %v161_v26 = vadd.f32 %v1851_v25, %v1678_v18  ;;  %v155_v27 = vpop.f32.mrb[3].mxu0 }
  0xe1   :  { %193 = vst.msk [vmem:[#allocation3] sm:$0xff] %vm192_vm4, %v184_v24  ;;  %v156_v28 = vadd.f32 %v1678_v18, %v155_v27  ;;  %217 = vrot.lane.b32.xlu0 %v184_v24, %s2205_s0 }
  0xe2   :  { %v187_v29 = vmax.f32 %v161_v26, 0.0 }
  0xe3   :  { %v186_v30 = vmax.f32 %v156_v28, 0.0  ;;  %v1854_v32 = vpop.f32.mrb[4].mxu0 }
  0xe4   :  { %196 = vst.msk [vmem:[#allocation3 + $0x18] sm:$0xff] %vm192_vm4, %v187_v29  ;;  %v2327_v33 = vadd.f32 %v1854_v32, %v1678_v18  ;;  %v165_v34 = vpop.f32.mrb[5].mxu0 }
  0xe5   :  { %195 = vst.msk [vmem:[#allocation3 + $0x10] sm:$0xff] %vm192_vm4, %v186_v30  ;;  %221 = vrot.lane.b32.xlu1 %v186_v30, %s2205_s0  ;;  %219 = vrot.lane.b32.xlu0 %v185_v23, %s2205_s0  ;;  %v2329_v35 = vadd.f32 %v1678_v18, %v165_v34 }
  0xe6   :  { %v189_v36 = vmax.f32 %v2327_v33, 0.0 }
  0xe7   :  { %v188_v37 = vmax.f32 %v2329_v35, 0.0  ;;  %v1857_v38 = vpop.f32.mrb[6].mxu0 }
  0xe8   :  { %198 = vst.msk [vmem:[#allocation3 + $0x28] sm:$0xff] %vm192_vm4, %v189_v36  ;;  %v2336_v39 = vadd.f32 %v1857_v38, %v1678_v18  ;;  %v175_v40 = vpop.f32.mrb[7].mxu0 }
  0xe9   :  { %223 = vrot.lane.b32.xlu1 %v187_v29, %s2205_s0  ;;  %197 = vst.msk [vmem:[#allocation3 + $0x20] sm:$0xff] %vm192_vm4, %v188_v37  ;;  %v176_v41 = vadd.f32 %v1678_v18, %v175_v40 }
  0xea   :  { %v191_v42 = vmax.f32 %v2336_v39, 0.0 }
  0xeb   :  { %v190_v43 = vmax.f32 %v176_v41, 0.0 }
  0xec   :  { %200 = vst.msk [vmem:[#allocation3 + $0x38] sm:$0xff] %vm192_vm4, %v191_v42 }
  0xed   :  { %451 = vrot.lane.b32.xlu1 %v367_v31, %s2206_s18  ;;  %199 = vst.msk [vmem:[#allocation3 + $0x30] sm:$0xff] %vm192_vm4, %v190_v43 }
 0x153   :  { %v218_v46 = vpop.permute.xlu0 %217 }
 0x154   :  { %1866 = vmatprep.mubr.msk.f32.mxu0 %vm192_vm4, %v218_v46 }
 0x157   :  { %v222_v50 = vpop.permute.xlu1 %221  ;;  %v220_v51 = vpop.permute.xlu0 %219 }
 0x158   :  { %1867 = vmatmul.mubr.msk.f32.vlgmr.msra.gmra.mrb[8].mxu0 %vm192_vm4, %v220_v51 }
 0x159   :  { %2050 = vmatpush3.bf16.msra.mxu0 %v2351_v47  ;;  %1869 = vmatprep.mubr.msk.f32.mxu0 %vm192_vm4, %v222_v50 }
 0x15a   :  { %2051 = vmatprep.subr.bf16.mxu0 %v2204_v17 }
 0x15b   :  { %v224_v53 = vpop.permute.xlu1 %223 }
 0x15c   :  { %1870 = vmatmul.mubr.msk.f32.gmra.mrb[10].mxu0 %vm192_vm4, %v224_v53 }
 0x15d   :  { %2053 = vmatpush3.bf16.msra.mxu0 %v2362_v52  ;;  %1886 = vmatprep.mubr.msk.f32.mxu0 %vm2207_vm5, %v2208_v54 }
 0x15e   :  { %2060 = vmatprep.subr.bf16.mxu0 %v2204_v17 }
 0x15f   :  { %v452_v8 = vpop.permute.xlu1 %451 }
 0x160   :  { %1887 = vmatmul.mubr.msk.f32.vlgmr.msra.gmra.mrb[12].mxu0 %vm192_vm4, %v366_v55 }
 0x161   :  { %2062 = vmatpush3.bf16.msra.mxu0 %v2351_v47  ;;  %1908 = vmatprep.mubr.msk.f32.mxu0 %vm2207_vm5, %v2208_v54 }
 0x162   :  { %2063 = vmatprep.subr.bf16.mxu0 %v2204_v17 }
 0x165   :  { %2065 = vmatpush3.bf16.msra.mxu0 %v2362_v52 }
 0x166   :  { %2072 = vmatprep.subr.bf16.mxu0 %v2204_v17 }
 0x22b   :  { %v1868_v56 = vpop.f32.mrb[8].mxu0 }
 0x22c   :  { %v315_v57 = vpop.f32.mrb[9].mxu0  ;;  %v321_v25 = vadd.f32 %v1868_v56, %v2383_v58 }
 0x22d   :  { %v316_v61 = vadd.f32 %v2383_v58, %v315_v57 }
 0x22f   :  { %v2385_v59 = vpop.f32.mrb[10].mxu0 }
 0x230   :  { %v2387_v60 = vpop.f32.mrb[11].mxu0 }
 0x233   :  { %v438_v62 = vpop.f32.mrb[12].mxu0 }
 0x234   :  { %v442_v63 = vadd.f32 %v438_v62, %v316_v61  ;;  %v1888_v0 = vpop.f32.mrb[13].mxu0 }
 0x236   :  { %2139 = vtanh.f32 %v442_v63  ;;  %v1698_v2 = vmul.f32 -1.442695, %v442_v63 }
 0x238   :  { %2141 = vpow2.f32 %v1698_v2  ;;  %v331_v2 = vadd.f32 %v2385_v59, %v2383_v58 }
 0x240   :  { %v2140_v1 = vpop.eup %2139 }
 0x241   :  { %456 = vrot.lane.b32.xlu0 %v2140_v1, %s2209_s1 }
 0x242   :  { %v2142_v3 = vpop.eup %2141 }
 0x243   :  { %v446_v4 = vadd.f32 1.0, %v2142_v3 }
 0x245   :  { %2143 = vrcp.f32 %v446_v4 }
 0x24f   :  { %v2144_v5 = vpop.eup %2143 }
 0x250   :  { %v454_v9 = vmul.f32 %v2144_v5, %v452_v8 }
 0x2b3   :  { %v457_v6 = vpop.permute.xlu0 %456 }
 0x2b4   :  { %v459_v7 = vmul.f32 %v2144_v5, %v457_v6 }
 0x2b6   :  { %461 = vrot.lane.b32.xlu0 %v459_v7, %s2206_s18 }
 0x2ba   :  { %225 = vrot.lane.b32.xlu0 %v188_v37, %s2205_s0 }
 0x2be   :  { %229 = vrot.lane.b32.xlu0 %v190_v43, %s2205_s0  ;;  %v326_v43 = vadd.f32 %v2383_v58, %v2387_v60 }
 0x328   :  { %v462_v10 = vpop.permute.xlu0 %461 }
 0x329   :  { %v464_v11 = vadd.f32 %v462_v10, %v454_v9 }
 0x32b   :  { %2145 = vtanh.f32 %v464_v11 }
 0x32c   :  { %v226_v12 = vpop.permute.xlu0 %225 }
 0x32d   :  { %1872 = vmatprep.mubr.msk.f32.mxu1 %vm192_vm4, %v226_v12 }
 0x330   :  { %v230_v18 = vpop.permute.xlu0 %229 }
 0x335   :  { %v2146_v13 = vpop.eup %2145 }
 0x336   :  { %467 = vrot.lane.b32.xlu1 %v2146_v13, %s2209_s1 }
 0x33a   :  { %227 = vrot.lane.b32.xlu1 %v189_v36, %s2205_s0 }
 0x33e   :  { %231 = vrot.lane.b32.xlu1 %v191_v42, %s2205_s0 }
 0x3a8   :  { %v468_v14 = vpop.permute.xlu1 %467 }
 0x3a9   :  { %v2402_v15 = vmul.f32 %v2144_v5, %v468_v14 }
 0x3ab   :  { %478 = vrot.lane.b32.xlu0 %v2402_v15, %s2206_s18 }
 0x3ac   :  { %v228_v16 = vpop.permute.xlu1 %227 }
 0x3ad   :  { %1873 = vmatmul.mubr.msk.f32.vlgmr.msra.gmra.mrb[0].mxu1 %vm192_vm4, %v228_v16 }
 0x3ae   :  { %1875 = vmatprep.mubr.msk.f32.mxu1 %vm192_vm4, %v230_v18  ;;  %2056 = vmatpush3.bf16.msra.mxu1 %v2351_v47 }
 0x3af   :  { %2057 = vmatprep.subr.bf16.mxu1 %v2204_v17 }
 0x3b0   :  { %v232_v19 = vpop.permute.xlu1 %231 }
 0x3b1   :  { %1876 = vmatmul.mubr.msk.f32.gmra.mrb[2].mxu1 %vm192_vm4, %v232_v19 }
 0x3b2   :  { %2059 = vmatpush3.bf16.msra.mxu1 %v2362_v52  ;;  %1897 = vmatprep.mubr.msk.f32.mxu1 %vm2207_vm5, %v2208_v54 }
 0x3b3   :  { %2066 = vmatprep.subr.bf16.mxu1 %v2204_v17 }
 0x41d   :  { %v479_v20 = vpop.permute.xlu0 %478 }
 0x41e   :  { %1898 = vmatmul.mubr.msk.f32.vlgmr.msra.gmra.mrb[4].mxu1 %vm192_vm4, %v479_v20 }
 0x41f   :  { %2068 = vmatpush3.bf16.msra.mxu1 %v2351_v47  ;;  %1919 = vmatprep.mubr.msk.f32.mxu1 %vm2207_vm5, %v2208_v54 }
 0x420   :  { %2069 = vmatprep.subr.bf16.mxu1 %v2204_v17 }
 0x423   :  { %2071 = vmatpush3.bf16.msra.mxu1 %v2362_v52 }
 0x424   :  { %2078 = vmatprep.subr.bf16.mxu1 %v2204_v17 }
 0x480   :  { %v2422_v21 = vpop.f32.mrb[0].mxu1 }
 0x481   :  { %v2424_v22 = vpop.f32.mrb[1].mxu1 }
 0x484   :  { %v2426_v23 = vpop.f32.mrb[2].mxu1 }
 0x485   :  { %v2428_v24 = vpop.f32.mrb[3].mxu1 }
 0x4f1   :  { %v548_v26 = vpop.f32.mrb[4].mxu1 }
 0x4f2   :  { %v552_v27 = vadd.f32 %v548_v26, %v321_v25  ;;  %v1899_v28 = vpop.f32.mrb[5].mxu1  ;;  %v336_v25 = vadd.f32 %v2383_v58, %v2424_v22 }
 0x4f4   :  { %2147 = vtanh.f32 %v552_v27  ;;  %v1700_v30 = vmul.f32 -1.442695, %v552_v27 }
 0x4f6   :  { %2149 = vpow2.f32 %v1700_v30 }
 0x4fe   :  { %v2148_v29 = vpop.eup %2147 }
 0x4ff   :  { %562 = vrot.lane.b32.xlu1 %v2148_v29, %s2209_s1 }
 0x500   :  { %v2150_v31 = vpop.eup %2149 }
 0x501   :  { %v556_v32 = vadd.f32 1.0, %v2150_v31 }
 0x503   :  { %2151 = vrcp.f32 %v556_v32 }
 0x50d   :  { %v2152_v33 = vpop.eup %2151 }
 0x50e   :  { %v560_v36 = vmul.f32 %v2152_v33, %v464_v11 }
 0x571   :  { %v563_v34 = vpop.permute.xlu1 %562 }
 0x572   :  { %v565_v35 = vmul.f32 %v2152_v33, %v563_v34 }
 0x574   :  { %567 = vrot.lane.b32.xlu0 %v565_v35, %s2206_s18 }
 0x5e6   :  { %v568_v37 = vpop.permute.xlu0 %567 }
 0x5e7   :  { %v570_v38 = vadd.f32 %v568_v37, %v560_v36 }
 0x5e9   :  { %2153 = vtanh.f32 %v570_v38 }
 0x5f3   :  { %v2154_v39 = vpop.eup %2153 }
 0x5f4   :  { %573 = vrot.lane.b32.xlu1 %v2154_v39, %s2209_s1 }
 0x666   :  { %v574_v40 = vpop.permute.xlu1 %573 }
 0x667   :  { %v2434_v41 = vmul.f32 %v2152_v33, %v574_v40 }
 0x669   :  { %583 = vrot.lane.b32.xlu0 %v2434_v41, %s2206_s18 }
 0x6db   :  { %v584_v42 = vpop.permute.xlu0 %583 }
 0x6dc   :  { %1909 = vmatmul.mubr.msk.f32.vlgmr.msra.gmra.mrb[14].mxu0 %vm192_vm4, %v584_v42 }
 0x6dd   :  { %2074 = vmatpush3.bf16.msra.mxu0 %v2351_v47  ;;  %1930 = vmatprep.mubr.msk.f32.mxu0 %vm2207_vm5, %v2208_v54 }
 0x6de   :  { %2075 = vmatprep.subr.bf16.mxu0 %v2204_v17 }
 0x6e1   :  { %2077 = vmatpush3.bf16.msra.mxu0 %v2362_v52 }
 0x6e2   :  { %2084 = vmatprep.subr.bf16.mxu0 %v2204_v17 }
 0x7af   :  { %v653_v44 = vpop.f32.mrb[14].mxu0 }
 0x7b0   :  { %v657_v45 = vadd.f32 %v653_v44, %v326_v43  ;;  %v1910_v46 = vpop.f32.mrb[15].mxu0  ;;  %v341_v43 = vadd.f32 %v2422_v21, %v2383_v58 }
 0x7b2   :  { %2155 = vtanh.f32 %v657_v45  ;;  %v1702_v49 = vmul.f32 -1.442695, %v657_v45 }
 0x7b4   :  { %2157 = vpow2.f32 %v1702_v49 }
 0x7bc   :  { %v2156_v48 = vpop.eup %2155 }
 0x7bd   :  { %667 = vrot.lane.b32.xlu1 %v2156_v48, %s2209_s1 }
 0x7be   :  { %v2158_v50 = vpop.eup %2157 }
 0x7bf   :  { %v661_v51 = vadd.f32 1.0, %v2158_v50 }
 0x7c1   :  { %2159 = vrcp.f32 %v661_v51 }
 0x7cb   :  { %v2160_v53 = vpop.eup %2159 }
 0x7cc   :  { %v665_v57 = vmul.f32 %v2160_v53, %v570_v38 }
 0x82f   :  { %v668_v55 = vpop.permute.xlu1 %667 }
 0x830   :  { %v670_v56 = vmul.f32 %v2160_v53, %v668_v55 }
 0x832   :  { %672 = vrot.lane.b32.xlu0 %v670_v56, %s2206_s18 }
 0x8a4   :  { %v673_v61 = vpop.permute.xlu0 %672 }
 0x8a5   :  { %v675_v60 = vadd.f32 %v673_v61, %v665_v57 }
 0x8a7   :  { %2161 = vtanh.f32 %v675_v60 }
 0x8b1   :  { %v2162_v62 = vpop.eup %2161 }
 0x8b2   :  { %678 = vrot.lane.b32.xlu1 %v2162_v62, %s2209_s1 }
 0x924   :  { %v679_v63 = vpop.permute.xlu1 %678 }
 0x925   :  { %v2450_v0 = vmul.f32 %v2160_v53, %v679_v63 }
 0x927   :  { %688 = vrot.lane.b32.xlu0 %v2450_v0, %s2206_s18 }
 0x999   :  { %v689_v1 = vpop.permute.xlu0 %688 }
 0x99a   :  { %1920 = vmatmul.mubr.msk.f32.vlgmr.msra.gmra.mrb[6].mxu1 %vm192_vm4, %v689_v1 }
 0x99b   :  { %2080 = vmatpush3.bf16.msra.mxu1 %v2351_v47  ;;  %1941 = vmatprep.mubr.msk.f32.mxu1 %vm2207_vm5, %v2208_v54 }
 0x99c   :  { %2081 = vmatprep.subr.bf16.mxu1 %v2204_v17 }
 0x99f   :  { %2083 = vmatpush3.bf16.msra.mxu1 %v2362_v52 }
 0x9a0   :  { %2090 = vmatprep.subr.bf16.mxu1 %v2204_v17 }
 0xa6d   :  { %v758_v3 = vpop.f32.mrb[6].mxu1 }
 0xa6e   :  { %v762_v4 = vadd.f32 %v758_v3, %v331_v2  ;;  %v1921_v5 = vpop.f32.mrb[7].mxu1 }
 0xa70   :  { %2163 = vtanh.f32 %v762_v4  ;;  %v1704_v7 = vmul.f32 -1.442695, %v762_v4 }
 0xa72   :  { %2165 = vpow2.f32 %v1704_v7 }
 0xa7a   :  { %v2164_v6 = vpop.eup %2163 }
 0xa7b   :  { %772 = vrot.lane.b32.xlu1 %v2164_v6, %s2209_s1 }
 0xa7c   :  { %v2166_v8 = vpop.eup %2165 }
 0xa7d   :  { %v766_v9 = vadd.f32 1.0, %v2166_v8 }
 0xa7f   :  { %2167 = vrcp.f32 %v766_v9 }
 0xa89   :  { %v2168_v10 = vpop.eup %2167 }
 0xa8a   :  { %v770_v13 = vmul.f32 %v2168_v10, %v675_v60  ;;  %v346_v60 = vadd.f32 %v2383_v58, %v2428_v24 }
 0xaed   :  { %v773_v11 = vpop.permute.xlu1 %772 }
 0xaee   :  { %v775_v12 = vmul.f32 %v2168_v10, %v773_v11 }
 0xaf0   :  { %777 = vrot.lane.b32.xlu0 %v775_v12, %s2206_s18 }
 0xb62   :  { %v778_v14 = vpop.permute.xlu0 %777 }
 0xb63   :  { %v780_v59 = vadd.f32 %v778_v14, %v770_v13 }
 0xb65   :  { %2169 = vtanh.f32 %v780_v59 }
 0xb6f   :  { %v2170_v16 = vpop.eup %2169 }
 0xb70   :  { %783 = vrot.lane.b32.xlu1 %v2170_v16, %s2209_s1 }
 0xbe2   :  { %v784_v18 = vpop.permute.xlu1 %783 }
 0xbe3   :  { %v2466_v19 = vmul.f32 %v2168_v10, %v784_v18 }
 0xbe5   :  { %793 = vrot.lane.b32.xlu0 %v2466_v19, %s2206_s18 }
 0xc57   :  { %v794_v20 = vpop.permute.xlu0 %793 }
 0xc58   :  { %1931 = vmatmul.mubr.msk.f32.vlgmr.msra.gmra.mrb[16].mxu0 %vm192_vm4, %v794_v20 }
 0xc59   :  { %2086 = vmatpush3.bf16.msra.mxu0 %v2351_v47  ;;  %1952 = vmatprep.mubr.msk.f32.mxu0 %vm2207_vm5, %v2208_v54 }
 0xc5a   :  { %2087 = vmatprep.subr.bf16.mxu0 %v2204_v17 }
 0xc5d   :  { %2089 = vmatpush3.bf16.msra.mxu0 %v2362_v52 }
 0xd2b   :  { %v863_v26 = vpop.f32.mrb[16].mxu0 }
 0xd2c   :  { %v867_v27 = vadd.f32 %v863_v26, %v336_v25  ;;  %v1932_v28 = vpop.f32.mrb[17].mxu0 }
 0xd2e   :  { %2171 = vtanh.f32 %v867_v27  ;;  %v1706_v30 = vmul.f32 -1.442695, %v867_v27 }
 0xd30   :  { %2173 = vpow2.f32 %v1706_v30 }
 0xd38   :  { %v2172_v29 = vpop.eup %2171 }
 0xd39   :  { %877 = vrot.lane.b32.xlu1 %v2172_v29, %s2209_s1 }
 0xd3a   :  { %v2174_v31 = vpop.eup %2173 }
 0xd3b   :  { %v871_v32 = vadd.f32 1.0, %v2174_v31 }
 0xd3d   :  { %2175 = vrcp.f32 %v871_v32 }
 0xd47   :  { %v2176_v33 = vpop.eup %2175 }
 0xd48   :  { %v875_v36 = vmul.f32 %v2176_v33, %v780_v59  ;;  %v351_v59 = vadd.f32 %v2426_v23, %v2383_v58  ;;  %v1221_v58 = vld [vmem:[%s2664_s5] sm:$0xff]  ;;  %v1222_v23 = vld [vmem:[%s2664_s5 + $0x8] sm:$0xff] }
 0xd49   :  { %v2096_v32 = vpack.c.bf16 %v1222_v23, %v1221_v58  ;;  %v1526_v58 = vld [vmem:[%s2666_s6 + $0x10] sm:$0xff]  ;;  %v1527_v23 = vld [vmem:[%s2666_s6 + $0x18] sm:$0xff] }
 0xd4b   :  { %2097 = vmatprep.subr.bf16.mxu0 %v2096_v32 }
 0xdab   :  { %v878_v34 = vpop.permute.xlu1 %877 }
 0xdac   :  { %v880_v35 = vmul.f32 %v2176_v33, %v878_v34 }
 0xdae   :  { %882 = vrot.lane.b32.xlu0 %v880_v35, %s2206_s18 }
 0xe20   :  { %v883_v37 = vpop.permute.xlu0 %882 }
 0xe21   :  { %v885_v22 = vadd.f32 %v883_v37, %v875_v36  ;;  %v1225_v37 = vld [vmem:[%s2664_s5 + $0x20] sm:$0xff] }
 0xe23   :  { %2177 = vtanh.f32 %v885_v22 }
 0xe2d   :  { %v2178_v38 = vpop.eup %2177 }
 0xe2e   :  { %888 = vrot.lane.b32.xlu1 %v2178_v38, %s2209_s1 }
 0xea0   :  { %v889_v39 = vpop.permute.xlu1 %888 }
 0xea1   :  { %v2481_v40 = vmul.f32 %v2176_v33, %v889_v39 }
 0xea3   :  { %898 = vrot.lane.b32.xlu0 %v2481_v40, %s2206_s18 }
 0xf15   :  { %v899_v42 = vpop.permute.xlu0 %898 }
 0xf16   :  { %1942 = vmatmul.mubr.msk.f32.vlgmr.msra.gmra.mrb[8].mxu1 %vm192_vm4, %v899_v42  ;;  %v1228_v42 = vld [vmem:[%s2664_s5 + $0x38] sm:$0xff] }
 0xf17   :  { %2092 = vmatpush3.bf16.msra.mxu1 %v2351_v47  ;;  %1963 = vmatprep.mubr.msk.f32.mxu1 %vm2207_vm5, %v2208_v54 }
 0xf18   :  { %2093 = vmatprep.subr.bf16.mxu1 %v2204_v17 }
 0xf1b   :  { %2095 = vmatpush3.bf16.msra.mxu1 %v2362_v52 }
 0xfe9   :  { %v968_v44 = vpop.f32.mrb[8].mxu1 }
 0xfea   :  { %v972_v45 = vadd.f32 %v968_v44, %v341_v43  ;;  %v1943_v46 = vpop.f32.mrb[9].mxu1 }
 0xfec   :  { %2179 = vtanh.f32 %v972_v45  ;;  %v1708_v49 = vmul.f32 -1.442695, %v972_v45 }
 0xfee   :  { %2181 = vpow2.f32 %v1708_v49 }
 0xff6   :  { %v2180_v48 = vpop.eup %2179 }
 0xff7   :  { %982 = vrot.lane.b32.xlu1 %v2180_v48, %s2209_s1 }
 0xff8   :  { %v2182_v47 = vpop.eup %2181 }
 0xff9   :  { %v976_v50 = vadd.f32 1.0, %v2182_v47  ;;  %v1229_v47 = vld [vmem:[%s2664_s5 + $0x40] sm:$0xff] }
 0xffb   :  { %2183 = vrcp.f32 %v976_v50  ;;  %v1230_v50 = vld [vmem:[%s2664_s5 + $0x48] sm:$0xff] }
0x1005   :  { %v2184_v54 = vpop.eup %2183 }
0x1006   :  { %v980_v52 = vmul.f32 %v2184_v54, %v885_v22  ;;  %v1226_v22 = vld [vmem:[%s2664_s5 + $0x28] sm:$0xff] }
0x1007   :  { %v2104_v38 = vpack.c.bf16 %v1226_v22, %v1225_v37  ;;  %v1722_v37 = vld [vmem:[%s2661_s7 + $0x3] ss:$0 sm:$0xff] }
0x1069   :  { %v983_v51 = vpop.permute.xlu1 %982 }
0x106a   :  { %v985_v17 = vmul.f32 %v2184_v54, %v983_v51 }
0x106c   :  { %987 = vrot.lane.b32.xlu0 %v985_v17, %s2206_s18 }
0x10de   :  { %v988_v53 = vpop.permute.xlu0 %987 }
0x10df   :  { %v990_v21 = vadd.f32 %v988_v53, %v980_v52 }
0x10e1   :  { %2185 = vtanh.f32 %v990_v21 }
0x10eb   :  { %v2186_v55 = vpop.eup %2185 }
0x10ec   :  { %993 = vrot.lane.b32.xlu1 %v2186_v55, %s2209_s1 }
0x115e   :  { %v994_v56 = vpop.permute.xlu1 %993 }
0x115f   :  { %v2496_v57 = vmul.f32 %v2184_v54, %v994_v56  ;;  %v2112_v54 = vpack.c.bf16 %v1230_v50, %v1229_v47 }
0x1161   :  { %1003 = vrot.lane.b32.xlu0 %v2496_v57, %s2206_s18  ;;  %2113 = vmatprep.subr.bf16.mxu1 %v2112_v54 }
0x11d3   :  { %v1004_v61 = vpop.permute.xlu0 %1003 }
0x11d4   :  { %1953 = vmatmul.mubr.msk.f32.vlgmr.msra.gmra.mrb[18].mxu0 %vm192_vm4, %v1004_v61 }
0x11d5   :  { %2099 = vmatpush3.bf16.msra.mxu0 %v2096_v32  ;;  %v2124_v32 = vpack.c.bf16 %v1527_v23, %v1526_v58 }
0x12a7   :  { %v1073_v62 = vpop.f32.mrb[18].mxu0 }
0x12a8   :  { %v1077_v63 = vadd.f32 %v1073_v62, %v346_v60  ;;  %v1954_v1 = vpop.f32.mrb[19].mxu0  ;;  %v1231_v60 = vld [vmem:[%s2664_s5 + $0x50] sm:$0xff]  ;;  %v1232_v62 = vld [vmem:[%s2664_s5 + $0x58] sm:$0xff] }
0x12aa   :  { %2187 = vtanh.f32 %v1077_v63  ;;  %v1710_v3 = vmul.f32 -1.442695, %v1077_v63  ;;  %v2116_v63 = vpack.c.bf16 %v1232_v62, %v1231_v60 }
0x12ac   :  { %2189 = vpow2.f32 %v1710_v3 }
0x12b4   :  { %v2188_v2 = vpop.eup %2187 }
0x12b5   :  { %1087 = vrot.lane.b32.xlu1 %v2188_v2, %s2209_s1 }
0x12b6   :  { %v2190_v4 = vpop.eup %2189 }
0x12b7   :  { %v1081_v5 = vadd.f32 1.0, %v2190_v4 }
0x12b9   :  { %2191 = vrcp.f32 %v1081_v5  ;;  %v1524_v5 = vld [vmem:[%s2666_s6] sm:$0xff] }
0x12c3   :  { %v2192_v6 = vpop.eup %2191 }
0x12c4   :  { %v1085_v9 = vmul.f32 %v2192_v6, %v990_v21 }
0x1327   :  { %v1088_v7 = vpop.permute.xlu1 %1087 }
0x1328   :  { %v1090_v8 = vmul.f32 %v2192_v6, %v1088_v7 }
0x132a   :  { %1092 = vrot.lane.b32.xlu0 %v1090_v8, %s2206_s18  ;;  %v1713_v8 = vld [vmem:[%s2661_s7 + $0x2] ss:$0 sm:$0xff] }
0x139c   :  { %v1093_v10 = vpop.permute.xlu0 %1092 }
0x139d   :  { %v1095_v24 = vadd.f32 %v1093_v10, %v1085_v9 }
0x139f   :  { %2193 = vtanh.f32 %v1095_v24 }
0x13a9   :  { %v2194_v11 = vpop.eup %2193 }
0x13aa   :  { %1098 = vrot.lane.b32.xlu1 %v2194_v11, %s2209_s1 }
0x141c   :  { %v1099_v12 = vpop.permute.xlu1 %1098 }
0x141d   :  { %v1101_v13 = vmul.f32 %v2192_v6, %v1099_v12  ;;  %v1525_v6 = vld [vmem:[%s2666_s6 + $0x8] sm:$0xff] }
0x141e   :  { %v2120_v7 = vpack.c.bf16 %v1525_v6, %v1524_v5 }
0x141f   :  { %1108 = vrot.lane.b32.xlu0 %v1101_v13, %s2206_s18 }
0x1491   :  { %v1109_v14 = vpop.permute.xlu0 %1108 }
0x1492   :  { %1964 = vmatmul.mubr.msk.f32.vlgmr.msra.gmra.mrb[10].mxu1 %vm192_vm4, %v1109_v14 }
0x1493   :  { %2115 = vmatpush3.bf16.msra.mxu1 %v2112_v54 }
0x1494   :  { %2117 = vmatprep.subr.bf16.mxu1 %v2116_v63 }
0x1497   :  { %2119 = vmatpush3.bf16.msra.mxu1 %v2116_v63 }
0x1498   :  { %2121 = vmatprep.subr.bf16.mxu1 %v2120_v7 }
0x1565   :  { %v1178_v16 = vpop.f32.mrb[10].mxu1 }
0x1566   :  { %v1182_v18 = vadd.f32 %v1178_v16, %v351_v59  ;;  %v1965_v20 = vpop.f32.mrb[11].mxu1 }
0x1568   :  { %2195 = vtanh.f32 %v1182_v18  ;;  %v1712_v26 = vmul.f32 -1.442695, %v1182_v18 }
0x156a   :  { %2197 = vpow2.f32 %v1712_v26 }
0x1572   :  { %v2196_v25 = vpop.eup %2195 }
0x1573   :  { %1192 = vrot.lane.b32.xlu1 %v2196_v25, %s2209_s1 }
0x1574   :  { %v2198_v27 = vpop.eup %2197 }
0x1575   :  { %v1186_v28 = vadd.f32 1.0, %v2198_v27 }
0x1577   :  { %2199 = vrcp.f32 %v1186_v28 }
0x1581   :  { %v2200_v29 = vpop.eup %2199 }
0x1582   :  { %v1190_v33 = vmul.f32 %v2200_v29, %v1095_v24 }
0x15e5   :  { %v1193_v30 = vpop.permute.xlu1 %1192 }
0x15e6   :  { %v1195_v31 = vmul.f32 %v2200_v29, %v1193_v30 }
0x15e8   :  { %1197 = vrot.lane.b32.xlu0 %v1195_v31, %s2206_s18 }
0x15ec   :  { %472 = vrot.lane.b32.xlu0 %v2402_v15, %s2209_s1  ;;  %v1223_v15 = vld [vmem:[%s2664_s5 + $0x10] sm:$0xff] }
0x15f0   :  { %683 = vrot.lane.b32.xlu0 %v2450_v0, %s2209_s1  ;;  %v1224_v0 = vld [vmem:[%s2664_s5 + $0x18] sm:$0xff] }
0x15f1   :  { %v2100_v34 = vpack.c.bf16 %v1224_v0, %v1223_v15 }
0x15f3   :  { %2101 = vmatprep.subr.bf16.mxu0 %v2100_v34 }
0x15f4   :  { %893 = vrot.lane.b32.xlu0 %v2481_v40, %s2209_s1  ;;  %2103 = vmatpush3.bf16.msra.mxu0 %v2100_v34  ;;  %v1227_v40 = vld [vmem:[%s2664_s5 + $0x30] sm:$0xff] }
0x15f5   :  { %2105 = vmatprep.subr.bf16.mxu0 %v2104_v38  ;;  %v2108_v43 = vpack.c.bf16 %v1228_v42, %v1227_v40 }
0x15f8   :  { %1103 = vrot.lane.b32.xlu0 %v1101_v13, %s2209_s1  ;;  %2107 = vmatpush3.bf16.msra.mxu0 %v2104_v38 }
0x15f9   :  { %2109 = vmatprep.subr.bf16.mxu0 %v2108_v43 }
0x15fc   :  { %2111 = vmatpush3.bf16.msra.mxu0 %v2108_v43 }
0x165a   :  { %v1198_v35 = vpop.permute.xlu0 %1197 }
0x165b   :  { %v1200_v36 = vadd.f32 %v1198_v35, %v1190_v33 }
0x165d   :  { %2201 = vtanh.f32 %v1200_v36 }
0x165e   :  { %v473_v39 = vpop.permute.xlu0 %472 }
0x165f   :  { %476 = vst.msk [vmem:[#allocation3] sm:$0xff] %vm475_vm6, %v473_v39 }
0x1662   :  { %v684_v44 = vpop.permute.xlu0 %683 }
0x1663   :  { %686 = vst.msk [vmem:[#allocation3 + $0x10] sm:$0xff] %vm475_vm6, %v684_v44 }
0x1666   :  { %v894_v45 = vpop.permute.xlu0 %893  ;;  %v1233_v46 = vld [vmem:[#allocation3] sm:$0xff] }
0x1667   :  { %v2202_v48 = vpop.eup %2201  ;;  %896 = vst.msk [vmem:[#allocation3 + $0x20] sm:$0xff] %vm475_vm6, %v894_v45  ;;  %1982 = vmatprep.mubr.msk.f32.mxu0 %vm1245_vm7, %v1233_v46 }
0x1668   :  { %1203 = vrot.lane.b32.xlu1 %v2202_v48, %s2209_s1 }
0x166a   :  { %v1104_v49 = vpop.permute.xlu0 %1103  ;;  %v1235_v21 = vld [vmem:[#allocation3 + $0x10] sm:$0xff] }
0x166b   :  { %1106 = vst.msk [vmem:[#allocation3 + $0x30] sm:$0xff] %vm475_vm6, %v1104_v49 }
0x166c   :  { %578 = vrot.lane.b32.xlu1 %v2434_v41, %s2209_s1 }
0x166e   :  { %v1237_v56 = vld [vmem:[#allocation3 + $0x20] sm:$0xff] }
0x1670   :  { %788 = vrot.lane.b32.xlu1 %v2466_v19, %s2209_s1 }
0x1672   :  { %v1239_v61 = vld [vmem:[#allocation3 + $0x30] sm:$0xff] }
0x1674   :  { %998 = vrot.lane.b32.xlu1 %v2496_v57, %s2209_s1 }
0x16da   :  { %v1204_v51 = vpop.permute.xlu1 %1203 }
0x16db   :  { %v1206_v17 = vmul.f32 %v2200_v29, %v1204_v51 }
0x16dd   :  { %1212 = vrot.lane.b32.xlu0 %v1206_v17, %s2206_s18  ;;  %1208 = vrot.lane.b32.xlu1 %v1206_v17, %s2209_s1 }
0x16de   :  { %v579_v41 = vpop.permute.xlu1 %578 }
0x16df   :  { %581 = vst.msk [vmem:[#allocation3 + $0x8] sm:$0xff] %vm475_vm6, %v579_v41 }
0x16e1   :  { %1217 = vrot.lane.b32.xlu1 %v1200_v36, %s2205_s0 }
0x16e2   :  { %v789_v19 = vpop.permute.xlu1 %788 }
0x16e3   :  { %791 = vst.msk [vmem:[#allocation3 + $0x18] sm:$0xff] %vm475_vm6, %v789_v19 }
0x16e6   :  { %v999_v52 = vpop.permute.xlu1 %998  ;;  %v1234_v53 = vld [vmem:[#allocation3 + $0x8] sm:$0xff] }
0x16e7   :  { %1001 = vst.msk [vmem:[#allocation3 + $0x28] sm:$0xff] %vm475_vm6, %v999_v52  ;;  %1983 = vmatmul.mubr.msk.f32.vlgmr.msra.gmra.mrb[20].mxu0 %vm1245_vm7, %v1234_v53 }
0x16e8   :  { %1985 = vmatprep.mubr.msk.f32.mxu0 %vm1245_vm7, %v1235_v21 }
0x16ea   :  { %v1236_v55 = vld [vmem:[#allocation3 + $0x18] sm:$0xff] }
0x16eb   :  { %1986 = vmatmul.mubr.msk.f32.gmra.mrb[22].mxu0 %vm1245_vm7, %v1236_v55 }
0x16ec   :  { %1988 = vmatprep.mubr.msk.f32.mxu0 %vm1245_vm7, %v1237_v56 }
0x16ee   :  { %v1238_v57 = vld [vmem:[#allocation3 + $0x28] sm:$0xff] }
0x16ef   :  { %1989 = vmatmul.mubr.msk.f32.gmra.mrb[24].mxu0 %vm1245_vm7, %v1238_v57 }
0x16f0   :  { %1991 = vmatprep.mubr.msk.f32.mxu0 %vm1245_vm7, %v1239_v61  ;;  %v1731_v61 = vld [vmem:[%s2661_s7 + $0x4] ss:$0 sm:$0xff] }
0x174f   :  { %v1213_v1 = vpop.permute.xlu0 %1212  ;;  %v1209_v2 = vpop.permute.xlu1 %1208 }
0x1750   :  { %1215 = vst.msk [vmem:[%s2665_s9] sm:$0xff] %vm192_vm4, %v1213_v1 }
0x1751   :  { %1211 = vst.msk [vmem:[#allocation3 + $0x38] sm:$0xff] %vm475_vm6, %v1209_v2 }
0x1753   :  { %v1218_v3 = vpop.permute.xlu1 %1217 }
0x1754   :  { %1220 = vst.msk [vmem:[%s2665_s9 + $0x8] sm:$0xff] %vm192_vm4, %v1218_v3 }
0x1758   :  { %v1240_v4 = vld [vmem:[#allocation3 + $0x38] sm:$0xff] }
0x1759   :  { %1992 = vmatmul.mubr.msk.f32.gmra.mrb[26].mxu0 %vm1245_vm7, %v1240_v4 }
0x17ba   :  { %v1984_v9 = vpop.f32.mrb[20].mxu0 }
0x17bb   :  { %v1342_v10 = vadd.f32 %v1984_v9, %v1713_v8  ;;  %v1336_v24 = vpop.f32.mrb[21].mxu0 }
0x17bc   :  { %v1337_v11 = vadd.f32 %v1713_v8, %v1336_v24 }
0x17bd   :  { %v1376_v14 = vmax.f32 %v1342_v10, 0.0 }
0x17be   :  { %v1375_v12 = vmax.f32 %v1337_v11, 0.0  ;;  %v1987_v13 = vpop.f32.mrb[22].mxu0 }
0x17bf   :  { %v1352_v59 = vadd.f32 %v1987_v13, %v1713_v8  ;;  %v1346_v16 = vpop.f32.mrb[23].mxu0 }
0x17c0   :  { %v1347_v18 = vadd.f32 %v1713_v8, %v1346_v16  ;;  %2002 = vmatprep.mubr.msk.f32.mxu1 %vm192_vm4, %v1375_v12 }
0x17c1   :  { %2003 = vmatmul.mubr.msk.f32.vlgmr.msra.gmra.mrb[12].mxu1 %vm192_vm4, %v1376_v14  ;;  %v1378_v26 = vmax.f32 %v1352_v59, 0.0 }
0x17c2   :  { %v1377_v20 = vmax.f32 %v1347_v18, 0.0  ;;  %v1990_v25 = vpop.f32.mrb[24].mxu0  ;;  %2123 = vmatpush3.bf16.msra.mxu1 %v2120_v7 }
0x17c3   :  { %v1362_v27 = vadd.f32 %v1990_v25, %v1713_v8  ;;  %v1356_v28 = vpop.f32.mrb[25].mxu0  ;;  %2125 = vmatprep.subr.bf16.mxu1 %v2124_v32 }
0x17c4   :  { %v1357_v29 = vadd.f32 %v1713_v8, %v1356_v28  ;;  %2005 = vmatprep.mubr.msk.f32.mxu1 %vm192_vm4, %v1377_v20 }
0x17c5   :  { %2006 = vmatmul.mubr.msk.f32.gmra.mrb[14].mxu1 %vm192_vm4, %v1378_v26  ;;  %v1380_v31 = vmax.f32 %v1362_v27, 0.0 }
0x17c6   :  { %v1379_v30 = vmax.f32 %v1357_v29, 0.0  ;;  %2127 = vmatpush3.bf16.msra.mxu1 %v2124_v32 }
0x17c8   :  { %2008 = vmatprep.mubr.msk.f32.mxu1 %vm192_vm4, %v1379_v30 }
0x17c9   :  { %2009 = vmatmul.mubr.msk.f32.gmra.mrb[16].mxu1 %vm192_vm4, %v1380_v31 }
0x182c   :  { %v1993_v15 = vpop.f32.mrb[26].mxu0 }
0x182d   :  { %v1372_v0 = vadd.f32 %v1993_v15, %v1713_v8  ;;  %v1366_v33 = vpop.f32.mrb[27].mxu0 }
0x182e   :  { %v1367_v34 = vadd.f32 %v1713_v8, %v1366_v33 }
0x182f   :  { %v1382_v36 = vmax.f32 %v1372_v0, 0.0 }
0x1830   :  { %v1381_v35 = vmax.f32 %v1367_v34, 0.0 }
0x1832   :  { %2011 = vmatprep.mubr.msk.f32.mxu1 %vm192_vm4, %v1381_v35 }
0x1833   :  { %2012 = vmatmul.mubr.msk.f32.gmra.mrb[18].mxu1 %vm192_vm4, %v1382_v36 }
0x1894   :  { %v2004_v22 = vpop.f32.mrb[12].mxu1 }
0x1895   :  { %v1483_v38 = vadd.f32 %v2004_v22, %v1722_v37  ;;  %v1477_v39 = vpop.f32.mrb[13].mxu1 }
0x1896   :  { %v1478_v40 = vadd.f32 %v1722_v37, %v1477_v39 }
0x1897   :  { %v1517_v44 = vmax.f32 %v1483_v38, 0.0 }
0x1898   :  { %v1516_v42 = vmax.f32 %v1478_v40, 0.0  ;;  %v2007_v43 = vpop.f32.mrb[14].mxu1 }
0x1899   :  { %v1493_v45 = vadd.f32 %v2007_v43, %v1722_v37  ;;  %v1487_v46 = vpop.f32.mrb[15].mxu1 }
0x189a   :  { %v1488_v48 = vadd.f32 %v1722_v37, %v1487_v46  ;;  %2022 = vmatprep.mubr.msk.f32.mxu1 %vm192_vm4, %v1516_v42 }
0x189b   :  { %2023 = vmatmul.mubr.msk.f32.vlgmr.msra.gmra.mrb[20].mxu1 %vm192_vm4, %v1517_v44  ;;  %v1519_v50 = vmax.f32 %v1493_v45, 0.0 }
0x189c   :  { %v1518_v49 = vmax.f32 %v1488_v48, 0.0  ;;  %v2010_v47 = vpop.f32.mrb[16].mxu1 }
0x189d   :  { %v1503_v54 = vadd.f32 %v2010_v47, %v1722_v37  ;;  %v1497_v51 = vpop.f32.mrb[17].mxu1 }
0x189e   :  { %v1498_v17 = vadd.f32 %v1722_v37, %v1497_v51  ;;  %2025 = vmatprep.mubr.msk.f32.mxu1 %vm192_vm4, %v1518_v49 }
0x189f   :  { %2026 = vmatmul.mubr.msk.f32.gmra.mrb[22].mxu1 %vm192_vm4, %v1519_v50  ;;  %v1521_v19 = vmax.f32 %v1503_v54, 0.0 }
0x18a0   :  { %v1520_v41 = vmax.f32 %v1498_v17, 0.0 }
0x18a2   :  { %2028 = vmatprep.mubr.msk.f32.mxu1 %vm192_vm4, %v1520_v41 }
0x18a3   :  { %2029 = vmatmul.mubr.msk.f32.gmra.mrb[24].mxu1 %vm192_vm4, %v1521_v19 }
0x1906   :  { %v2013_v52 = vpop.f32.mrb[18].mxu1 }
0x1907   :  { %v1513_v53 = vadd.f32 %v2013_v52, %v1722_v37  ;;  %v1507_v21 = vpop.f32.mrb[19].mxu1 }
0x1908   :  { %v1508_v55 = vadd.f32 %v1722_v37, %v1507_v21 }
0x1909   :  { %v1523_v57 = vmax.f32 %v1513_v53, 0.0 }
0x190a   :  { %v1522_v56 = vmax.f32 %v1508_v55, 0.0 }
0x190c   :  { %2031 = vmatprep.mubr.msk.f32.mxu1 %vm192_vm4, %v1522_v56 }
0x190d   :  { %2032 = vmatmul.mubr.msk.f32.gmra.mrb[26].mxu1 %vm192_vm4, %v1523_v57 }
0x196e   :  { %v2024_v60 = vpop.f32.mrb[20].mxu1 }
0x196f   :  { %v1628_v62 = vadd.f32 %v2024_v60, %v1731_v61  ;;  %v1622_v63 = vpop.f32.mrb[21].mxu1 }
0x1970   :  { %v1623_v1 = vadd.f32 %v1731_v61, %v1622_v63 }
0x1971   :  { %1663 = vst.msk [vmem:[%s2667_s8 + $0x8] sm:$0xff] %vm1661_vm8, %v1628_v62 }
0x1972   :  { %1662 = vst.msk [vmem:[%s2667_s8] sm:$0xff] %vm1661_vm8, %v1623_v1  ;;  %v2027_v2 = vpop.f32.mrb[22].mxu1 }
0x1973   :  { %v1638_v3 = vadd.f32 %v2027_v2, %v1731_v61  ;;  %v1632_v4 = vpop.f32.mrb[23].mxu1 }
0x1974   :  { %v1633_v5 = vadd.f32 %v1731_v61, %v1632_v4 }
0x1975   :  { %1665 = vst.msk [vmem:[%s2667_s8 + $0x18] sm:$0xff] %vm1661_vm8, %v1638_v3 }
0x1976   :  { %1664 = vst.msk [vmem:[%s2667_s8 + $0x10] sm:$0xff] %vm1661_vm8, %v1633_v5  ;;  %v2030_v6 = vpop.f32.mrb[24].mxu1 }
0x1977   :  { %v1648_v7 = vadd.f32 %v2030_v6, %v1731_v61  ;;  %v1642_v8 = vpop.f32.mrb[25].mxu1 }
0x1978   :  { %v1643_v9 = vadd.f32 %v1731_v61, %v1642_v8 }
0x1979   :  { %1667 = vst.msk [vmem:[%s2667_s8 + $0x28] sm:$0xff] %vm1661_vm8, %v1648_v7 }
0x197a   :  { %1666 = vst.msk [vmem:[%s2667_s8 + $0x20] sm:$0xff] %vm1661_vm8, %v1643_v9 }
0x19e0   :  { %v2033_v10 = vpop.f32.mrb[26].mxu1 }
0x19e1   :  { %v1658_v24 = vadd.f32 %v2033_v10, %v1731_v61  ;;  %v1652_v11 = vpop.f32.mrb[27].mxu1 }
0x19e2   :  { %v1653_v12 = vadd.f32 %v1731_v61, %v1652_v11 }
0x19e3   :  { %1669 = vst.msk [vmem:[%s2667_s8 + $0x38] sm:$0xff] %vm1661_vm8, %v1658_v24 }
0x19e4   :  { %1668 = vst.msk [vmem:[%s2667_s8 + $0x30] sm:$0xff] %vm1661_vm8, %v1653_v12 }

</bundles_post_ra>
